<compile_context>
chip_gen: v7x
topology: tpu7x:2x2x1
jax: 0.10.0
libtpu: 0.0.40
codegen_flags: <defaults>
</compile_context>

<pallas_src>
import jax
import jax.numpy as jnp
from jax import lax
from jax.experimental import pallas as pl
from jax.experimental.pallas import tpu as pltpu

# Small, deterministic problem sizes implied by the module.
B, S, D = 2, 8, 32          # batch, seq, d_model
H = 4                       # heads
DK = D // H                 # head dim
DFF = 64                    # feed-forward hidden
N_LAYERS = 2                # number of encoder layers
EPS = 1e-6
BS = B * S                  # folded token count

# Packed parameter buffer: weights[N_LAYERS, W_ROWS, W_COLS] (f32).
# 128-lane-aligned sub-blocks:
#   lanes [  0: 96)   rows [0:D)    Wqkv (D, 3D)
#   lanes [128:160)   rows [0:D)    Wo   (D, D)
#   lanes [256:320)   rows [0:D)    W1   (D, DFF)
#   lanes [384:416)   rows [0:DFF)  W2   (DFF, D)
#   lanes [512: ...)  per-layer vectors, one per row:
#     row 0: bqkv(3D)  1: bo(D)  2: b1(DFF)  3: b2(D)
#     row 4: ln1_a(D)  5: ln1_b(D)  6: ln2_a(D)  7: ln2_b(D)
#     rows 8 / 9 of layer 0: final-LayerNorm a / b
W_ROWS = max(D, DFF)        # 64
W_COLS = 640
VEC0 = 512


def _layer_norm(x, a, b):
    """Annotated-Transformer LayerNorm: a * (x - mean) / (std + eps) + b,
    with unbiased (n-1) std.  Two-pass form (matches the reference numerics).
    """
    n = x.shape[-1]
    mean = jnp.sum(x, axis=-1, keepdims=True) * (1.0 / n)
    d = x - mean
    var = jnp.sum(d * d, axis=-1, keepdims=True) * (1.0 / (n - 1))
    inv = pl.reciprocal(jnp.sqrt(var) + EPS, approx=False)
    return d * inv * a + b


def encoder_kernel(x_ref, mask_ref, w_ref, out_ref, attn_ref):
    x = x_ref[...]                                       # (B*S, D)
    scale = 1.0 / jnp.sqrt(jnp.float32(DK))

    # Hoisted per-batch mask bias at full (S, S) score shape: 0 where attend,
    # -1e9 where masked.  Computed once; reused by every head of every layer.
    m = mask_ref[...]                                    # (B, S)
    mask_bias = []
    for b in range(B):
        bias = jnp.where(m[b:b + 1, :] > 0,
                         jnp.float32(0.0), jnp.float32(-1e9))   # (1, S)
        mask_bias.append(jnp.broadcast_to(bias, (S, S)))         # (S, S)

    # Static Python loop over layers; all parameter indexing is compile-time.
    for l in range(N_LAYERS):
        # ---------- sublayer 1: pre-norm + multi-head self-attention + residual
        ln1a = w_ref[l, 4:5, VEC0:VEC0 + D]              # (1, D)
        ln1b = w_ref[l, 5:6, VEC0:VEC0 + D]
        xn = _layer_norm(x, ln1a, ln1b)                  # (B*S, D)

        wqkv = w_ref[l, 0:D, 0:3 * D]                    # (D, 3D)
        bqkv = w_ref[l, 0:1, VEC0:VEC0 + 3 * D]          # (1, 3D)
        # One fused QKV projection for all B*S tokens.
        qkv = jnp.dot(xn, wqkv, preferred_element_type=jnp.float32) + bqkv

        # Attention per (batch, head); each head's PV result lands in the
        # (B*S, D) VMEM scratch at its static lane offset (no concatenate).
        for b in range(B):
            r0, r1 = b * S, (b + 1) * S
            qb = qkv[r0:r1, 0:D]                         # (S, D)
            kb = qkv[r0:r1, D:2 * D]
            vb = qkv[r0:r1, 2 * D:3 * D]
            bias = mask_bias[b]                          # (S, S)
            for h in range(H):
                c0, c1 = h * DK, (h + 1) * DK
                qh = qb[:, c0:c1]                        # (S, DK)
                kh = kb[:, c0:c1]
                vh = vb[:, c0:c1]
                sc = lax.dot_general(
                    qh, kh,
                    dimension_numbers=(((1,), (1,)), ((), ())),
                    preferred_element_type=jnp.float32)   # (S, S)
                # Additive mask (equivalent to replacement after softmax).
                sc = sc * scale + bias
                sc = sc - jnp.max(sc, axis=-1, keepdims=True)
                p = jnp.exp(sc)
                p = p * pl.reciprocal(jnp.sum(p, axis=-1, keepdims=True),
                                      approx=False)
                attn_ref[r0:r1, c0:c1] = jnp.dot(
                    p, vh, preferred_element_type=jnp.float32)

        attn = attn_ref[...]                             # (B*S, D)
        wo = w_ref[l, 0:D, 128:128 + D]                  # (D, D)
        bo = w_ref[l, 1:2, VEC0:VEC0 + D]                # (1, D)
        # Single full-width Wo matmul covering both batches.
        x = x + jnp.dot(attn, wo, preferred_element_type=jnp.float32) + bo

        # ---------- sublayer 2: pre-norm + position-wise FFN (ReLU) + residual
        ln2a = w_ref[l, 6:7, VEC0:VEC0 + D]
        ln2b = w_ref[l, 7:8, VEC0:VEC0 + D]
        xn = _layer_norm(x, ln2a, ln2b)                  # (B*S, D)

        w1 = w_ref[l, 0:D, 256:256 + DFF]                # (D, DFF)
        b1 = w_ref[l, 2:3, VEC0:VEC0 + DFF]              # (1, DFF)
        hdn = jnp.maximum(
            jnp.dot(xn, w1, preferred_element_type=jnp.float32) + b1, 0.0)
        w2 = w_ref[l, 0:DFF, 384:384 + D]                # (DFF, D)
        b2 = w_ref[l, 3:4, VEC0:VEC0 + D]                # (1, D)
        x = x + jnp.dot(hdn, w2, preferred_element_type=jnp.float32) + b2

    # ---------- final LayerNorm
    fna = w_ref[0, 8:9, VEC0:VEC0 + D]
    fnb = w_ref[0, 9:10, VEC0:VEC0 + D]
    out_ref[...] = _layer_norm(x, fna, fnb)


def pack_params(p):
    """Pack all 18 parameter arrays into one VMEM-friendly weight buffer."""
    w = jnp.zeros((N_LAYERS, W_ROWS, W_COLS), jnp.float32)
    wqkv = jnp.concatenate([p["wq"], p["wk"], p["wv"]], axis=-1)  # (L, D, 3D)
    w = w.at[:, 0:D, 0:3 * D].set(wqkv)
    w = w.at[:, 0:D, 128:128 + D].set(p["wo"])
    w = w.at[:, 0:D, 256:256 + DFF].set(p["w1"])
    w = w.at[:, 0:DFF, 384:384 + D].set(p["w2"])

    bqkv = jnp.concatenate([p["bq"], p["bk"], p["bv"]], axis=-1)  # (L, 3D)
    w = w.at[:, 0, VEC0:VEC0 + 3 * D].set(bqkv)
    w = w.at[:, 1, VEC0:VEC0 + D].set(p["bo"])
    w = w.at[:, 2, VEC0:VEC0 + DFF].set(p["b1"])
    w = w.at[:, 3, VEC0:VEC0 + D].set(p["b2"])
    w = w.at[:, 4, VEC0:VEC0 + D].set(p["ln1a"])
    w = w.at[:, 5, VEC0:VEC0 + D].set(p["ln1b"])
    w = w.at[:, 6, VEC0:VEC0 + D].set(p["ln2a"])
    w = w.at[:, 7, VEC0:VEC0 + D].set(p["ln2b"])
    w = w.at[0, 8, VEC0:VEC0 + D].set(p["fna"].reshape(D))
    w = w.at[0, 9, VEC0:VEC0 + D].set(p["fnb"].reshape(D))
    return w


def encoder_forward(x, mask, params):
    w = pack_params(params)
    x2 = x.reshape(BS, D)                # fold batch into the token axis
    m2 = mask.reshape(B, S)
    out = pl.pallas_call(
        encoder_kernel,
        out_shape=jax.ShapeDtypeStruct((BS, D), jnp.float32),
        # Single program (no grid): whole operands resident in VMEM, one DMA
        # each (3 inputs + 1 output), no double-buffering bookkeeping.
        in_specs=[pl.BlockSpec(memory_space=pltpu.MemorySpace.VMEM)] * 3,
        out_specs=pl.BlockSpec(memory_space=pltpu.MemorySpace.VMEM),
        scratch_shapes=[pltpu.VMEM((BS, D), jnp.float32)],   # per-head PV slab
    )(x2, m2, w)
    return out.reshape(B, S, D)


# ----------------------------------------------------------------------------
# Pure-JAX reference (same math) for a correctness check.
def encoder_reference(x, mask, p):
    def ln(x, a, b):
        mean = jnp.mean(x, -1, keepdims=True)
        var = jnp.sum((x - mean) ** 2, -1, keepdims=True) / (x.shape[-1] - 1)
        return a * (x - mean) / (jnp.sqrt(var) + EPS) + b

    for l in range(N_LAYERS):
        xn = ln(x, p["ln1a"][l], p["ln1b"][l])
        q = xn @ p["wq"][l] + p["bq"][l]
        k = xn @ p["wk"][l] + p["bk"][l]
        v = xn @ p["wv"][l] + p["bv"][l]
        qh = q.reshape(B, S, H, DK).transpose(0, 2, 1, 3)
        kh = k.reshape(B, S, H, DK).transpose(0, 2, 1, 3)
        vh = v.reshape(B, S, H, DK).transpose(0, 2, 1, 3)
        sc = jnp.einsum("bhqd,bhkd->bhqk", qh, kh) / jnp.sqrt(jnp.float32(DK))
        sc = jnp.where(mask[:, None, :, :] > 0, sc, -1e9)
        pr = jax.nn.softmax(sc, axis=-1)
        o = jnp.einsum("bhqk,bhkd->bhqd", pr, vh)
        o = o.transpose(0, 2, 1, 3).reshape(B, S, D)
        x = x + (o @ p["wo"][l] + p["bo"][l])
        xn = ln(x, p["ln2a"][l], p["ln2b"][l])
        x = x + (jnp.maximum(xn @ p["w1"][l] + p["b1"][l], 0.0) @ p["w2"][l]
                 + p["b2"][l])
    return ln(x, p["fna"].reshape(D), p["fnb"].reshape(D))


def make_params(key):
    ks = jax.random.split(key, 12)
    n = lambda k, shape, s=0.05: (s * jax.random.normal(k, shape)).astype(jnp.float32)
    return {
        "wq": n(ks[0], (N_LAYERS, D, D)), "bq": n(ks[1], (N_LAYERS, D), 0.02),
        "wk": n(ks[2], (N_LAYERS, D, D)), "bk": n(ks[3], (N_LAYERS, D), 0.02),
        "wv": n(ks[4], (N_LAYERS, D, D)), "bv": n(ks[5], (N_LAYERS, D), 0.02),
        "wo": n(ks[6], (N_LAYERS, D, D)), "bo": n(ks[7], (N_LAYERS, D), 0.02),
        "ln1a": jnp.ones((N_LAYERS, D), jnp.float32),
        "ln1b": jnp.zeros((N_LAYERS, D), jnp.float32),
        "ln2a": jnp.ones((N_LAYERS, D), jnp.float32),
        "ln2b": jnp.zeros((N_LAYERS, D), jnp.float32),
        "w1": n(ks[8], (N_LAYERS, D, DFF)), "b1": n(ks[9], (N_LAYERS, DFF), 0.02),
        "w2": n(ks[10], (N_LAYERS, DFF, D)), "b2": n(ks[11], (N_LAYERS, D), 0.02),
        "fna": jnp.ones((1, D), jnp.float32),
        "fnb": jnp.zeros((1, D), jnp.float32),
    }


if __name__ == "__main__":
    key = jax.random.PRNGKey(0)
    kx, kp = jax.random.split(key)
    x = jax.random.normal(kx, (B, S, D), dtype=jnp.float32)
    mask = jnp.ones((B, 1, S), dtype=jnp.float32)
    mask = mask.at[1, 0, 6:].set(0.0)   # pad out last 2 tokens of batch 1
    params = make_params(kp)

    out = encoder_forward(x, mask, params)
    out = jax.block_until_ready(out)

    ref = encoder_reference(x, mask, params)
    assert out.shape == (B, S, D)
    assert jnp.allclose(out, ref, atol=1e-4, rtol=1e-4), (
        f"max abs err {jnp.max(jnp.abs(out - ref))}")
    print("KERNEL_OK")
</pallas_src>

<mosaic_0001>
module attributes {stable_mosaic.version = 11 : i64} {
  func.func @encoder_kernel(%arg0: memref<16x32xf32, #tpu.memory_space<vmem>>, %arg1: memref<2x8xf32, #tpu.memory_space<vmem>>, %arg2: memref<2x64x640xf32, #tpu.memory_space<vmem>>, %arg3: memref<16x32xf32, #tpu.memory_space<vmem>>, %arg4: memref<16x32xf32, #tpu.memory_space<vmem>>) attributes {dimension_semantics = [], scalar_prefetch = 0 : i64, scratch_operands = 1 : i64, tpu.core_type = #tpu.core_type<tc>} {
    %c0 = arith.constant 0 : index
    %c0_0 = arith.constant 0 : index
    %0 = vector.load %arg0[%c0, %c0_0] : memref<16x32xf32, #tpu.memory_space<vmem>>, vector<16x32xf32>
    %cst = arith.constant 8.000000e+00 : f32
    %1 = math.sqrt %cst : f32
    %cst_1 = arith.constant 1.000000e+00 : f32
    %2 = arith.divf %cst_1, %1 : f32
    %c0_2 = arith.constant 0 : index
    %c0_3 = arith.constant 0 : index
    %3 = vector.load %arg1[%c0_2, %c0_3] : memref<2x8xf32, #tpu.memory_space<vmem>>, vector<2x8xf32>
    %4 = vector.extract_strided_slice %3 {offsets = [0, 0], sizes = [1, 8], strides = [1, 1]} : vector<2x8xf32> to vector<1x8xf32>
    %cst_4 = arith.constant 0.000000e+00 : f32
    %5 = vector.broadcast %cst_4 : f32 to vector<1x8xf32>
    %6 = arith.cmpf ogt, %4, %5 : vector<1x8xf32>
    %cst_5 = arith.constant 0.000000e+00 : f32
    %cst_6 = arith.constant -1.000000e+09 : f32
    %7 = vector.broadcast %cst_5 : f32 to vector<1x8xf32>
    %8 = vector.broadcast %cst_6 : f32 to vector<1x8xf32>
    %9 = arith.select %6, %7, %8 : vector<1x8xi1>, vector<1x8xf32>
    %10 = vector.shape_cast %9 : vector<1x8xf32> to vector<1x8xf32>
    %11 = vector.broadcast %10 : vector<1x8xf32> to vector<8x8xf32>
    %12 = vector.extract_strided_slice %3 {offsets = [1, 0], sizes = [1, 8], strides = [1, 1]} : vector<2x8xf32> to vector<1x8xf32>
    %cst_7 = arith.constant 0.000000e+00 : f32
    %13 = vector.broadcast %cst_7 : f32 to vector<1x8xf32>
    %14 = arith.cmpf ogt, %12, %13 : vector<1x8xf32>
    %cst_8 = arith.constant 0.000000e+00 : f32
    %cst_9 = arith.constant -1.000000e+09 : f32
    %15 = vector.broadcast %cst_8 : f32 to vector<1x8xf32>
    %16 = vector.broadcast %cst_9 : f32 to vector<1x8xf32>
    %17 = arith.select %14, %15, %16 : vector<1x8xi1>, vector<1x8xf32>
    %18 = vector.shape_cast %17 : vector<1x8xf32> to vector<1x8xf32>
    %19 = vector.broadcast %18 : vector<1x8xf32> to vector<8x8xf32>
    %c0_10 = arith.constant 0 : index
    %c4 = arith.constant 4 : index
    %c512 = arith.constant 512 : index
    %20 = vector.load %arg2[%c0_10, %c4, %c512] : memref<2x64x640xf32, #tpu.memory_space<vmem>>, vector<1x1x32xf32>
    %21 = vector.shape_cast %20 : vector<1x1x32xf32> to vector<1x32xf32>
    %c0_11 = arith.constant 0 : index
    %c5 = arith.constant 5 : index
    %c512_12 = arith.constant 512 : index
    %22 = vector.load %arg2[%c0_11, %c5, %c512_12] : memref<2x64x640xf32, #tpu.memory_space<vmem>>, vector<1x1x32xf32>
    %23 = vector.shape_cast %22 : vector<1x1x32xf32> to vector<1x32xf32>
    %cst_13 = arith.constant dense<0.000000e+00> : vector<16xf32>
    %24 = vector.multi_reduction <add>, %0, %cst_13 [1] : vector<16x32xf32> to vector<16xf32>
    %25 = vector.shape_cast %24 : vector<16xf32> to vector<16x1xf32>
    %cst_14 = arith.constant 3.125000e-02 : f32
    %26 = vector.broadcast %cst_14 : f32 to vector<16x1xf32>
    %27 = arith.mulf %25, %26 : vector<16x1xf32>
    %28 = vector.broadcast %27 : vector<16x1xf32> to vector<16x32xf32>
    %29 = arith.subf %0, %28 : vector<16x32xf32>
    %30 = arith.mulf %29, %29 : vector<16x32xf32>
    %cst_15 = arith.constant dense<0.000000e+00> : vector<16xf32>
    %31 = vector.multi_reduction <add>, %30, %cst_15 [1] : vector<16x32xf32> to vector<16xf32>
    %32 = vector.shape_cast %31 : vector<16xf32> to vector<16x1xf32>
    %cst_16 = arith.constant 0.0322580636 : f32
    %33 = vector.broadcast %cst_16 : f32 to vector<16x1xf32>
    %34 = arith.mulf %32, %33 : vector<16x1xf32>
    %35 = math.sqrt %34 : vector<16x1xf32>
    %cst_17 = arith.constant 9.99999997E-7 : f32
    %36 = vector.broadcast %cst_17 : f32 to vector<16x1xf32>
    %37 = arith.addf %35, %36 : vector<16x1xf32>
    %38 = tpu.reciprocal %37 : vector<16x1xf32> -> vector<16x1xf32>
    %39 = vector.broadcast %38 : vector<16x1xf32> to vector<16x32xf32>
    %40 = arith.mulf %29, %39 : vector<16x32xf32>
    %41 = vector.broadcast %21 : vector<1x32xf32> to vector<16x32xf32>
    %42 = arith.mulf %40, %41 : vector<16x32xf32>
    %43 = vector.broadcast %23 : vector<1x32xf32> to vector<16x32xf32>
    %44 = arith.addf %42, %43 : vector<16x32xf32>
    %c0_18 = arith.constant 0 : index
    %c0_19 = arith.constant 0 : index
    %c0_20 = arith.constant 0 : index
    %45 = vector.load %arg2[%c0_18, %c0_19, %c0_20] : memref<2x64x640xf32, #tpu.memory_space<vmem>>, vector<1x32x96xf32>
    %46 = vector.shape_cast %45 : vector<1x32x96xf32> to vector<32x96xf32>
    %c0_21 = arith.constant 0 : index
    %c0_22 = arith.constant 0 : index
    %c512_23 = arith.constant 512 : index
    %47 = vector.load %arg2[%c0_21, %c0_22, %c512_23] : memref<2x64x640xf32, #tpu.memory_space<vmem>>, vector<1x1x96xf32>
    %48 = vector.shape_cast %47 : vector<1x1x96xf32> to vector<1x96xf32>
    %cst_24 = arith.constant dense<0.000000e+00> : vector<16x96xf32>
    %49 = tpu.matmul %44, %46, %cst_24 {dimension_numbers = #tpu.dot_dimension_numbers<[1], [0], [0], [1], [0, 0, 1, 1], [], []>} : vector<16x32xf32>, vector<32x96xf32>, vector<16x96xf32> -> vector<16x96xf32>
    %50 = vector.broadcast %48 : vector<1x96xf32> to vector<16x96xf32>
    %51 = arith.addf %49, %50 : vector<16x96xf32>
    %52 = vector.extract_strided_slice %51 {offsets = [0, 0], sizes = [8, 32], strides = [1, 1]} : vector<16x96xf32> to vector<8x32xf32>
    %53 = vector.extract_strided_slice %51 {offsets = [0, 32], sizes = [8, 32], strides = [1, 1]} : vector<16x96xf32> to vector<8x32xf32>
    %54 = vector.extract_strided_slice %51 {offsets = [0, 64], sizes = [8, 32], strides = [1, 1]} : vector<16x96xf32> to vector<8x32xf32>
    %55 = vector.extract_strided_slice %52 {offsets = [0, 0], sizes = [8, 8], strides = [1, 1]} : vector<8x32xf32> to vector<8x8xf32>
    %56 = vector.extract_strided_slice %53 {offsets = [0, 0], sizes = [8, 8], strides = [1, 1]} : vector<8x32xf32> to vector<8x8xf32>
    %57 = vector.extract_strided_slice %54 {offsets = [0, 0], sizes = [8, 8], strides = [1, 1]} : vector<8x32xf32> to vector<8x8xf32>
    %cst_25 = arith.constant dense<0.000000e+00> : vector<8x8xf32>
    %58 = tpu.matmul %55, %56, %cst_25 {dimension_numbers = #tpu.dot_dimension_numbers<[1], [1], [0], [0], [0, 0, 1, 0], [], []>} : vector<8x8xf32>, vector<8x8xf32>, vector<8x8xf32> -> vector<8x8xf32>
    %59 = vector.broadcast %2 : f32 to vector<8x8xf32>
    %60 = arith.mulf %58, %59 : vector<8x8xf32>
    %61 = arith.addf %60, %11 : vector<8x8xf32>
    %cst_26 = arith.constant dense<0xFF800000> : vector<8xf32>
    %62 = vector.multi_reduction <maximumf>, %61, %cst_26 [1] : vector<8x8xf32> to vector<8xf32>
    %63 = vector.shape_cast %62 : vector<8xf32> to vector<8x1xf32>
    %64 = vector.broadcast %63 : vector<8x1xf32> to vector<8x8xf32>
    %65 = arith.subf %61, %64 : vector<8x8xf32>
    %66 = math.exp %65 : vector<8x8xf32>
    %cst_27 = arith.constant dense<0.000000e+00> : vector<8xf32>
    %67 = vector.multi_reduction <add>, %66, %cst_27 [1] : vector<8x8xf32> to vector<8xf32>
    %68 = vector.shape_cast %67 : vector<8xf32> to vector<8x1xf32>
    %69 = tpu.reciprocal %68 : vector<8x1xf32> -> vector<8x1xf32>
    %70 = vector.broadcast %69 : vector<8x1xf32> to vector<8x8xf32>
    %71 = arith.mulf %66, %70 : vector<8x8xf32>
    %cst_28 = arith.constant dense<0.000000e+00> : vector<8x8xf32>
    %72 = tpu.matmul %71, %57, %cst_28 {dimension_numbers = #tpu.dot_dimension_numbers<[1], [0], [0], [1], [0, 0, 1, 1], [], []>} : vector<8x8xf32>, vector<8x8xf32>, vector<8x8xf32> -> vector<8x8xf32>
    %c0_29 = arith.constant 0 : index
    %c0_30 = arith.constant 0 : index
    %73 = vector.load %arg4[%c0_29, %c0_30] : memref<16x32xf32, #tpu.memory_space<vmem>>, vector<8x8xf32>
    tpu.vector_store %arg4[%c0_29, %c0_30], %72 {strides = array<i32>} : memref<16x32xf32, #tpu.memory_space<vmem>>, vector<8x8xf32>,
    %74 = vector.extract_strided_slice %52 {offsets = [0, 8], sizes = [8, 8], strides = [1, 1]} : vector<8x32xf32> to vector<8x8xf32>
    %75 = vector.extract_strided_slice %53 {offsets = [0, 8], sizes = [8, 8], strides = [1, 1]} : vector<8x32xf32> to vector<8x8xf32>
    %76 = vector.extract_strided_slice %54 {offsets = [0, 8], sizes = [8, 8], strides = [1, 1]} : vector<8x32xf32> to vector<8x8xf32>
    %cst_31 = arith.constant dense<0.000000e+00> : vector<8x8xf32>
    %77 = tpu.matmul %74, %75, %cst_31 {dimension_numbers = #tpu.dot_dimension_numbers<[1], [1], [0], [0], [0, 0, 1, 0], [], []>} : vector<8x8xf32>, vector<8x8xf32>, vector<8x8xf32> -> vector<8x8xf32>
    %78 = vector.broadcast %2 : f32 to vector<8x8xf32>
    %79 = arith.mulf %77, %78 : vector<8x8xf32>
    %80 = arith.addf %79, %11 : vector<8x8xf32>
    %cst_32 = arith.constant dense<0xFF800000> : vector<8xf32>
    %81 = vector.multi_reduction <maximumf>, %80, %cst_32 [1] : vector<8x8xf32> to vector<8xf32>
    %82 = vector.shape_cast %81 : vector<8xf32> to vector<8x1xf32>
    %83 = vector.broadcast %82 : vector<8x1xf32> to vector<8x8xf32>
    %84 = arith.subf %80, %83 : vector<8x8xf32>
    %85 = math.exp %84 : vector<8x8xf32>
    %cst_33 = arith.constant dense<0.000000e+00> : vector<8xf32>
    %86 = vector.multi_reduction <add>, %85, %cst_33 [1] : vector<8x8xf32> to vector<8xf32>
    %87 = vector.shape_cast %86 : vector<8xf32> to vector<8x1xf32>
    %88 = tpu.reciprocal %87 : vector<8x1xf32> -> vector<8x1xf32>
    %89 = vector.broadcast %88 : vector<8x1xf32> to vector<8x8xf32>
    %90 = arith.mulf %85, %89 : vector<8x8xf32>
    %cst_34 = arith.constant dense<0.000000e+00> : vector<8x8xf32>
    %91 = tpu.matmul %90, %76, %cst_34 {dimension_numbers = #tpu.dot_dimension_numbers<[1], [0], [0], [1], [0, 0, 1, 1], [], []>} : vector<8x8xf32>, vector<8x8xf32>, vector<8x8xf32> -> vector<8x8xf32>
    %c0_35 = arith.constant 0 : index
    %c8 = arith.constant 8 : index
    %92 = vector.load %arg4[%c0_35, %c8] : memref<16x32xf32, #tpu.memory_space<vmem>>, vector<8x8xf32>
    tpu.vector_store %arg4[%c0_35, %c8], %91 {strides = array<i32>} : memref<16x32xf32, #tpu.memory_space<vmem>>, vector<8x8xf32>,
    %93 = vector.extract_strided_slice %52 {offsets = [0, 16], sizes = [8, 8], strides = [1, 1]} : vector<8x32xf32> to vector<8x8xf32>
    %94 = vector.extract_strided_slice %53 {offsets = [0, 16], sizes = [8, 8], strides = [1, 1]} : vector<8x32xf32> to vector<8x8xf32>
    %95 = vector.extract_strided_slice %54 {offsets = [0, 16], sizes = [8, 8], strides = [1, 1]} : vector<8x32xf32> to vector<8x8xf32>
    %cst_36 = arith.constant dense<0.000000e+00> : vector<8x8xf32>
    %96 = tpu.matmul %93, %94, %cst_36 {dimension_numbers = #tpu.dot_dimension_numbers<[1], [1], [0], [0], [0, 0, 1, 0], [], []>} : vector<8x8xf32>, vector<8x8xf32>, vector<8x8xf32> -> vector<8x8xf32>
    %97 = vector.broadcast %2 : f32 to vector<8x8xf32>
    %98 = arith.mulf %96, %97 : vector<8x8xf32>
    %99 = arith.addf %98, %11 : vector<8x8xf32>
    %cst_37 = arith.constant dense<0xFF800000> : vector<8xf32>
    %100 = vector.multi_reduction <maximumf>, %99, %cst_37 [1] : vector<8x8xf32> to vector<8xf32>
    %101 = vector.shape_cast %100 : vector<8xf32> to vector<8x1xf32>
    %102 = vector.broadcast %101 : vector<8x1xf32> to vector<8x8xf32>
    %103 = arith.subf %99, %102 : vector<8x8xf32>
    %104 = math.exp %103 : vector<8x8xf32>
    %cst_38 = arith.constant dense<0.000000e+00> : vector<8xf32>
    %105 = vector.multi_reduction <add>, %104, %cst_38 [1] : vector<8x8xf32> to vector<8xf32>
    %106 = vector.shape_cast %105 : vector<8xf32> to vector<8x1xf32>
    %107 = tpu.reciprocal %106 : vector<8x1xf32> -> vector<8x1xf32>
    %108 = vector.broadcast %107 : vector<8x1xf32> to vector<8x8xf32>
    %109 = arith.mulf %104, %108 : vector<8x8xf32>
    %cst_39 = arith.constant dense<0.000000e+00> : vector<8x8xf32>
    %110 = tpu.matmul %109, %95, %cst_39 {dimension_numbers = #tpu.dot_dimension_numbers<[1], [0], [0], [1], [0, 0, 1, 1], [], []>} : vector<8x8xf32>, vector<8x8xf32>, vector<8x8xf32> -> vector<8x8xf32>
    %c0_40 = arith.constant 0 : index
    %c16 = arith.constant 16 : index
    %111 = vector.load %arg4[%c0_40, %c16] : memref<16x32xf32, #tpu.memory_space<vmem>>, vector<8x8xf32>
    tpu.vector_store %arg4[%c0_40, %c16], %110 {strides = array<i32>} : memref<16x32xf32, #tpu.memory_space<vmem>>, vector<8x8xf32>,
    %112 = vector.extract_strided_slice %52 {offsets = [0, 24], sizes = [8, 8], strides = [1, 1]} : vector<8x32xf32> to vector<8x8xf32>
    %113 = vector.extract_strided_slice %53 {offsets = [0, 24], sizes = [8, 8], strides = [1, 1]} : vector<8x32xf32> to vector<8x8xf32>
    %114 = vector.extract_strided_slice %54 {offsets = [0, 24], sizes = [8, 8], strides = [1, 1]} : vector<8x32xf32> to vector<8x8xf32>
    %cst_41 = arith.constant dense<0.000000e+00> : vector<8x8xf32>
    %115 = tpu.matmul %112, %113, %cst_41 {dimension_numbers = #tpu.dot_dimension_numbers<[1], [1], [0], [0], [0, 0, 1, 0], [], []>} : vector<8x8xf32>, vector<8x8xf32>, vector<8x8xf32> -> vector<8x8xf32>
    %116 = vector.broadcast %2 : f32 to vector<8x8xf32>
    %117 = arith.mulf %115, %116 : vector<8x8xf32>
    %118 = arith.addf %117, %11 : vector<8x8xf32>
    %cst_42 = arith.constant dense<0xFF800000> : vector<8xf32>
    %119 = vector.multi_reduction <maximumf>, %118, %cst_42 [1] : vector<8x8xf32> to vector<8xf32>
    %120 = vector.shape_cast %119 : vector<8xf32> to vector<8x1xf32>
    %121 = vector.broadcast %120 : vector<8x1xf32> to vector<8x8xf32>
    %122 = arith.subf %118, %121 : vector<8x8xf32>
    %123 = math.exp %122 : vector<8x8xf32>
    %cst_43 = arith.constant dense<0.000000e+00> : vector<8xf32>
    %124 = vector.multi_reduction <add>, %123, %cst_43 [1] : vector<8x8xf32> to vector<8xf32>
    %125 = vector.shape_cast %124 : vector<8xf32> to vector<8x1xf32>
    %126 = tpu.reciprocal %125 : vector<8x1xf32> -> vector<8x1xf32>
    %127 = vector.broadcast %126 : vector<8x1xf32> to vector<8x8xf32>
    %128 = arith.mulf %123, %127 : vector<8x8xf32>
    %cst_44 = arith.constant dense<0.000000e+00> : vector<8x8xf32>
    %129 = tpu.matmul %128, %114, %cst_44 {dimension_numbers = #tpu.dot_dimension_numbers<[1], [0], [0], [1], [0, 0, 1, 1], [], []>} : vector<8x8xf32>, vector<8x8xf32>, vector<8x8xf32> -> vector<8x8xf32>
    %c0_45 = arith.constant 0 : index
    %c24 = arith.constant 24 : index
    %130 = vector.load %arg4[%c0_45, %c24] : memref<16x32xf32, #tpu.memory_space<vmem>>, vector<8x8xf32>
    tpu.vector_store %arg4[%c0_45, %c24], %129 {strides = array<i32>} : memref<16x32xf32, #tpu.memory_space<vmem>>, vector<8x8xf32>,
    %131 = vector.extract_strided_slice %51 {offsets = [8, 0], sizes = [8, 32], strides = [1, 1]} : vector<16x96xf32> to vector<8x32xf32>
    %132 = vector.extract_strided_slice %51 {offsets = [8, 32], sizes = [8, 32], strides = [1, 1]} : vector<16x96xf32> to vector<8x32xf32>
    %133 = vector.extract_strided_slice %51 {offsets = [8, 64], sizes = [8, 32], strides = [1, 1]} : vector<16x96xf32> to vector<8x32xf32>
    %134 = vector.extract_strided_slice %131 {offsets = [0, 0], sizes = [8, 8], strides = [1, 1]} : vector<8x32xf32> to vector<8x8xf32>
    %135 = vector.extract_strided_slice %132 {offsets = [0, 0], sizes = [8, 8], strides = [1, 1]} : vector<8x32xf32> to vector<8x8xf32>
    %136 = vector.extract_strided_slice %133 {offsets = [0, 0], sizes = [8, 8], strides = [1, 1]} : vector<8x32xf32> to vector<8x8xf32>
    %cst_46 = arith.constant dense<0.000000e+00> : vector<8x8xf32>
    %137 = tpu.matmul %134, %135, %cst_46 {dimension_numbers = #tpu.dot_dimension_numbers<[1], [1], [0], [0], [0, 0, 1, 0], [], []>} : vector<8x8xf32>, vector<8x8xf32>, vector<8x8xf32> -> vector<8x8xf32>
    %138 = vector.broadcast %2 : f32 to vector<8x8xf32>
    %139 = arith.mulf %137, %138 : vector<8x8xf32>
    %140 = arith.addf %139, %19 : vector<8x8xf32>
    %cst_47 = arith.constant dense<0xFF800000> : vector<8xf32>
    %141 = vector.multi_reduction <maximumf>, %140, %cst_47 [1] : vector<8x8xf32> to vector<8xf32>
    %142 = vector.shape_cast %141 : vector<8xf32> to vector<8x1xf32>
    %143 = vector.broadcast %142 : vector<8x1xf32> to vector<8x8xf32>
    %144 = arith.subf %140, %143 : vector<8x8xf32>
    %145 = math.exp %144 : vector<8x8xf32>
    %cst_48 = arith.constant dense<0.000000e+00> : vector<8xf32>
    %146 = vector.multi_reduction <add>, %145, %cst_48 [1] : vector<8x8xf32> to vector<8xf32>
    %147 = vector.shape_cast %146 : vector<8xf32> to vector<8x1xf32>
    %148 = tpu.reciprocal %147 : vector<8x1xf32> -> vector<8x1xf32>
    %149 = vector.broadcast %148 : vector<8x1xf32> to vector<8x8xf32>
    %150 = arith.mulf %145, %149 : vector<8x8xf32>
    %cst_49 = arith.constant dense<0.000000e+00> : vector<8x8xf32>
    %151 = tpu.matmul %150, %136, %cst_49 {dimension_numbers = #tpu.dot_dimension_numbers<[1], [0], [0], [1], [0, 0, 1, 1], [], []>} : vector<8x8xf32>, vector<8x8xf32>, vector<8x8xf32> -> vector<8x8xf32>
    %c8_50 = arith.constant 8 : index
    %c0_51 = arith.constant 0 : index
    %152 = vector.load %arg4[%c8_50, %c0_51] : memref<16x32xf32, #tpu.memory_space<vmem>>, vector<8x8xf32>
    tpu.vector_store %arg4[%c8_50, %c0_51], %151 {strides = array<i32>} : memref<16x32xf32, #tpu.memory_space<vmem>>, vector<8x8xf32>,
    %153 = vector.extract_strided_slice %131 {offsets = [0, 8], sizes = [8, 8], strides = [1, 1]} : vector<8x32xf32> to vector<8x8xf32>
    %154 = vector.extract_strided_slice %132 {offsets = [0, 8], sizes = [8, 8], strides = [1, 1]} : vector<8x32xf32> to vector<8x8xf32>
    %155 = vector.extract_strided_slice %133 {offsets = [0, 8], sizes = [8, 8], strides = [1, 1]} : vector<8x32xf32> to vector<8x8xf32>
    %cst_52 = arith.constant dense<0.000000e+00> : vector<8x8xf32>
    %156 = tpu.matmul %153, %154, %cst_52 {dimension_numbers = #tpu.dot_dimension_numbers<[1], [1], [0], [0], [0, 0, 1, 0], [], []>} : vector<8x8xf32>, vector<8x8xf32>, vector<8x8xf32> -> vector<8x8xf32>
    %157 = vector.broadcast %2 : f32 to vector<8x8xf32>
    %158 = arith.mulf %156, %157 : vector<8x8xf32>
    %159 = arith.addf %158, %19 : vector<8x8xf32>
    %cst_53 = arith.constant dense<0xFF800000> : vector<8xf32>
    %160 = vector.multi_reduction <maximumf>, %159, %cst_53 [1] : vector<8x8xf32> to vector<8xf32>
    %161 = vector.shape_cast %160 : vector<8xf32> to vector<8x1xf32>
    %162 = vector.broadcast %161 : vector<8x1xf32> to vector<8x8xf32>
    %163 = arith.subf %159, %162 : vector<8x8xf32>
    %164 = math.exp %163 : vector<8x8xf32>
    %cst_54 = arith.constant dense<0.000000e+00> : vector<8xf32>
    %165 = vector.multi_reduction <add>, %164, %cst_54 [1] : vector<8x8xf32> to vector<8xf32>
    %166 = vector.shape_cast %165 : vector<8xf32> to vector<8x1xf32>
    %167 = tpu.reciprocal %166 : vector<8x1xf32> -> vector<8x1xf32>
    %168 = vector.broadcast %167 : vector<8x1xf32> to vector<8x8xf32>
    %169 = arith.mulf %164, %168 : vector<8x8xf32>
    %cst_55 = arith.constant dense<0.000000e+00> : vector<8x8xf32>
    %170 = tpu.matmul %169, %155, %cst_55 {dimension_numbers = #tpu.dot_dimension_numbers<[1], [0], [0], [1], [0, 0, 1, 1], [], []>} : vector<8x8xf32>, vector<8x8xf32>, vector<8x8xf32> -> vector<8x8xf32>
    %c8_56 = arith.constant 8 : index
    %c8_57 = arith.constant 8 : index
    %171 = vector.load %arg4[%c8_56, %c8_57] : memref<16x32xf32, #tpu.memory_space<vmem>>, vector<8x8xf32>
    tpu.vector_store %arg4[%c8_56, %c8_57], %170 {strides = array<i32>} : memref<16x32xf32, #tpu.memory_space<vmem>>, vector<8x8xf32>,
    %172 = vector.extract_strided_slice %131 {offsets = [0, 16], sizes = [8, 8], strides = [1, 1]} : vector<8x32xf32> to vector<8x8xf32>
    %173 = vector.extract_strided_slice %132 {offsets = [0, 16], sizes = [8, 8], strides = [1, 1]} : vector<8x32xf32> to vector<8x8xf32>
    %174 = vector.extract_strided_slice %133 {offsets = [0, 16], sizes = [8, 8], strides = [1, 1]} : vector<8x32xf32> to vector<8x8xf32>
    %cst_58 = arith.constant dense<0.000000e+00> : vector<8x8xf32>
    %175 = tpu.matmul %172, %173, %cst_58 {dimension_numbers = #tpu.dot_dimension_numbers<[1], [1], [0], [0], [0, 0, 1, 0], [], []>} : vector<8x8xf32>, vector<8x8xf32>, vector<8x8xf32> -> vector<8x8xf32>
    %176 = vector.broadcast %2 : f32 to vector<8x8xf32>
    %177 = arith.mulf %175, %176 : vector<8x8xf32>
    %178 = arith.addf %177, %19 : vector<8x8xf32>
    %cst_59 = arith.constant dense<0xFF800000> : vector<8xf32>
    %179 = vector.multi_reduction <maximumf>, %178, %cst_59 [1] : vector<8x8xf32> to vector<8xf32>
    %180 = vector.shape_cast %179 : vector<8xf32> to vector<8x1xf32>
    %181 = vector.broadcast %180 : vector<8x1xf32> to vector<8x8xf32>
    %182 = arith.subf %178, %181 : vector<8x8xf32>
    %183 = math.exp %182 : vector<8x8xf32>
    %cst_60 = arith.constant dense<0.000000e+00> : vector<8xf32>
    %184 = vector.multi_reduction <add>, %183, %cst_60 [1] : vector<8x8xf32> to vector<8xf32>
    %185 = vector.shape_cast %184 : vector<8xf32> to vector<8x1xf32>
    %186 = tpu.reciprocal %185 : vector<8x1xf32> -> vector<8x1xf32>
    %187 = vector.broadcast %186 : vector<8x1xf32> to vector<8x8xf32>
    %188 = arith.mulf %183, %187 : vector<8x8xf32>
    %cst_61 = arith.constant dense<0.000000e+00> : vector<8x8xf32>
    %189 = tpu.matmul %188, %174, %cst_61 {dimension_numbers = #tpu.dot_dimension_numbers<[1], [0], [0], [1], [0, 0, 1, 1], [], []>} : vector<8x8xf32>, vector<8x8xf32>, vector<8x8xf32> -> vector<8x8xf32>
    %c8_62 = arith.constant 8 : index
    %c16_63 = arith.constant 16 : index
    %190 = vector.load %arg4[%c8_62, %c16_63] : memref<16x32xf32, #tpu.memory_space<vmem>>, vector<8x8xf32>
    tpu.vector_store %arg4[%c8_62, %c16_63], %189 {strides = array<i32>} : memref<16x32xf32, #tpu.memory_space<vmem>>, vector<8x8xf32>,
    %191 = vector.extract_strided_slice %131 {offsets = [0, 24], sizes = [8, 8], strides = [1, 1]} : vector<8x32xf32> to vector<8x8xf32>
    %192 = vector.extract_strided_slice %132 {offsets = [0, 24], sizes = [8, 8], strides = [1, 1]} : vector<8x32xf32> to vector<8x8xf32>
    %193 = vector.extract_strided_slice %133 {offsets = [0, 24], sizes = [8, 8], strides = [1, 1]} : vector<8x32xf32> to vector<8x8xf32>
    %cst_64 = arith.constant dense<0.000000e+00> : vector<8x8xf32>
    %194 = tpu.matmul %191, %192, %cst_64 {dimension_numbers = #tpu.dot_dimension_numbers<[1], [1], [0], [0], [0, 0, 1, 0], [], []>} : vector<8x8xf32>, vector<8x8xf32>, vector<8x8xf32> -> vector<8x8xf32>
    %195 = vector.broadcast %2 : f32 to vector<8x8xf32>
    %196 = arith.mulf %194, %195 : vector<8x8xf32>
    %197 = arith.addf %196, %19 : vector<8x8xf32>
    %cst_65 = arith.constant dense<0xFF800000> : vector<8xf32>
    %198 = vector.multi_reduction <maximumf>, %197, %cst_65 [1] : vector<8x8xf32> to vector<8xf32>
    %199 = vector.shape_cast %198 : vector<8xf32> to vector<8x1xf32>
    %200 = vector.broadcast %199 : vector<8x1xf32> to vector<8x8xf32>
    %201 = arith.subf %197, %200 : vector<8x8xf32>
    %202 = math.exp %201 : vector<8x8xf32>
    %cst_66 = arith.constant dense<0.000000e+00> : vector<8xf32>
    %203 = vector.multi_reduction <add>, %202, %cst_66 [1] : vector<8x8xf32> to vector<8xf32>
    %204 = vector.shape_cast %203 : vector<8xf32> to vector<8x1xf32>
    %205 = tpu.reciprocal %204 : vector<8x1xf32> -> vector<8x1xf32>
    %206 = vector.broadcast %205 : vector<8x1xf32> to vector<8x8xf32>
    %207 = arith.mulf %202, %206 : vector<8x8xf32>
    %cst_67 = arith.constant dense<0.000000e+00> : vector<8x8xf32>
    %208 = tpu.matmul %207, %193, %cst_67 {dimension_numbers = #tpu.dot_dimension_numbers<[1], [0], [0], [1], [0, 0, 1, 1], [], []>} : vector<8x8xf32>, vector<8x8xf32>, vector<8x8xf32> -> vector<8x8xf32>
    %c8_68 = arith.constant 8 : index
    %c24_69 = arith.constant 24 : index
    %209 = vector.load %arg4[%c8_68, %c24_69] : memref<16x32xf32, #tpu.memory_space<vmem>>, vector<8x8xf32>
    tpu.vector_store %arg4[%c8_68, %c24_69], %208 {strides = array<i32>} : memref<16x32xf32, #tpu.memory_space<vmem>>, vector<8x8xf32>,
    %c0_70 = arith.constant 0 : index
    %c0_71 = arith.constant 0 : index
    %210 = vector.load %arg4[%c0_70, %c0_71] : memref<16x32xf32, #tpu.memory_space<vmem>>, vector<16x32xf32>
    %c0_72 = arith.constant 0 : index
    %c0_73 = arith.constant 0 : index
    %c128 = arith.constant 128 : index
    %211 = vector.load %arg2[%c0_72, %c0_73, %c128] : memref<2x64x640xf32, #tpu.memory_space<vmem>>, vector<1x32x32xf32>
    %212 = vector.shape_cast %211 : vector<1x32x32xf32> to vector<32x32xf32>
    %c0_74 = arith.constant 0 : index
    %c1 = arith.constant 1 : index
    %c512_75 = arith.constant 512 : index
    %213 = vector.load %arg2[%c0_74, %c1, %c512_75] : memref<2x64x640xf32, #tpu.memory_space<vmem>>, vector<1x1x32xf32>
    %214 = vector.shape_cast %213 : vector<1x1x32xf32> to vector<1x32xf32>
    %cst_76 = arith.constant dense<0.000000e+00> : vector<16x32xf32>
    %215 = tpu.matmul %210, %212, %cst_76 {dimension_numbers = #tpu.dot_dimension_numbers<[1], [0], [0], [1], [0, 0, 1, 1], [], []>} : vector<16x32xf32>, vector<32x32xf32>, vector<16x32xf32> -> vector<16x32xf32>
    %216 = arith.addf %0, %215 : vector<16x32xf32>
    %217 = vector.broadcast %214 : vector<1x32xf32> to vector<16x32xf32>
    %218 = arith.addf %216, %217 : vector<16x32xf32>
    %c0_77 = arith.constant 0 : index
    %c6 = arith.constant 6 : index
    %c512_78 = arith.constant 512 : index
    %219 = vector.load %arg2[%c0_77, %c6, %c512_78] : memref<2x64x640xf32, #tpu.memory_space<vmem>>, vector<1x1x32xf32>
    %220 = vector.shape_cast %219 : vector<1x1x32xf32> to vector<1x32xf32>
    %c0_79 = arith.constant 0 : index
    %c7 = arith.constant 7 : index
    %c512_80 = arith.constant 512 : index
    %221 = vector.load %arg2[%c0_79, %c7, %c512_80] : memref<2x64x640xf32, #tpu.memory_space<vmem>>, vector<1x1x32xf32>
    %222 = vector.shape_cast %221 : vector<1x1x32xf32> to vector<1x32xf32>
    %cst_81 = arith.constant dense<0.000000e+00> : vector<16xf32>
    %223 = vector.multi_reduction <add>, %218, %cst_81 [1] : vector<16x32xf32> to vector<16xf32>
    %224 = vector.shape_cast %223 : vector<16xf32> to vector<16x1xf32>
    %cst_82 = arith.constant 3.125000e-02 : f32
    %225 = vector.broadcast %cst_82 : f32 to vector<16x1xf32>
    %226 = arith.mulf %224, %225 : vector<16x1xf32>
    %227 = vector.broadcast %226 : vector<16x1xf32> to vector<16x32xf32>
    %228 = arith.subf %218, %227 : vector<16x32xf32>
    %229 = arith.mulf %228, %228 : vector<16x32xf32>
    %cst_83 = arith.constant dense<0.000000e+00> : vector<16xf32>
    %230 = vector.multi_reduction <add>, %229, %cst_83 [1] : vector<16x32xf32> to vector<16xf32>
    %231 = vector.shape_cast %230 : vector<16xf32> to vector<16x1xf32>
    %cst_84 = arith.constant 0.0322580636 : f32
    %232 = vector.broadcast %cst_84 : f32 to vector<16x1xf32>
    %233 = arith.mulf %231, %232 : vector<16x1xf32>
    %234 = math.sqrt %233 : vector<16x1xf32>
    %cst_85 = arith.constant 9.99999997E-7 : f32
    %235 = vector.broadcast %cst_85 : f32 to vector<16x1xf32>
    %236 = arith.addf %234, %235 : vector<16x1xf32>
    %237 = tpu.reciprocal %236 : vector<16x1xf32> -> vector<16x1xf32>
    %238 = vector.broadcast %237 : vector<16x1xf32> to vector<16x32xf32>
    %239 = arith.mulf %228, %238 : vector<16x32xf32>
    %240 = vector.broadcast %220 : vector<1x32xf32> to vector<16x32xf32>
    %241 = arith.mulf %239, %240 : vector<16x32xf32>
    %242 = vector.broadcast %222 : vector<1x32xf32> to vector<16x32xf32>
    %243 = arith.addf %241, %242 : vector<16x32xf32>
    %c0_86 = arith.constant 0 : index
    %c0_87 = arith.constant 0 : index
    %c256 = arith.constant 256 : index
    %244 = vector.load %arg2[%c0_86, %c0_87, %c256] : memref<2x64x640xf32, #tpu.memory_space<vmem>>, vector<1x32x64xf32>
    %245 = vector.shape_cast %244 : vector<1x32x64xf32> to vector<32x64xf32>
    %c0_88 = arith.constant 0 : index
    %c2 = arith.constant 2 : index
    %c512_89 = arith.constant 512 : index
    %246 = vector.load %arg2[%c0_88, %c2, %c512_89] : memref<2x64x640xf32, #tpu.memory_space<vmem>>, vector<1x1x64xf32>
    %247 = vector.shape_cast %246 : vector<1x1x64xf32> to vector<1x64xf32>
    %cst_90 = arith.constant dense<0.000000e+00> : vector<16x64xf32>
    %248 = tpu.matmul %243, %245, %cst_90 {dimension_numbers = #tpu.dot_dimension_numbers<[1], [0], [0], [1], [0, 0, 1, 1], [], []>} : vector<16x32xf32>, vector<32x64xf32>, vector<16x64xf32> -> vector<16x64xf32>
    %249 = vector.broadcast %247 : vector<1x64xf32> to vector<16x64xf32>
    %250 = arith.addf %248, %249 : vector<16x64xf32>
    %cst_91 = arith.constant 0.000000e+00 : f32
    %251 = vector.broadcast %cst_91 : f32 to vector<16x64xf32>
    %252 = arith.maximumf %250, %251 : vector<16x64xf32>
    %c0_92 = arith.constant 0 : index
    %c0_93 = arith.constant 0 : index
    %c384 = arith.constant 384 : index
    %253 = vector.load %arg2[%c0_92, %c0_93, %c384] : memref<2x64x640xf32, #tpu.memory_space<vmem>>, vector<1x64x32xf32>
    %254 = vector.shape_cast %253 : vector<1x64x32xf32> to vector<64x32xf32>
    %c0_94 = arith.constant 0 : index
    %c3 = arith.constant 3 : index
    %c512_95 = arith.constant 512 : index
    %255 = vector.load %arg2[%c0_94, %c3, %c512_95] : memref<2x64x640xf32, #tpu.memory_space<vmem>>, vector<1x1x32xf32>
    %256 = vector.shape_cast %255 : vector<1x1x32xf32> to vector<1x32xf32>
    %cst_96 = arith.constant dense<0.000000e+00> : vector<16x32xf32>
    %257 = tpu.matmul %252, %254, %cst_96 {dimension_numbers = #tpu.dot_dimension_numbers<[1], [0], [0], [1], [0, 0, 1, 1], [], []>} : vector<16x64xf32>, vector<64x32xf32>, vector<16x32xf32> -> vector<16x32xf32>
    %258 = arith.addf %218, %257 : vector<16x32xf32>
    %259 = vector.broadcast %256 : vector<1x32xf32> to vector<16x32xf32>
    %260 = arith.addf %258, %259 : vector<16x32xf32>
    %c1_97 = arith.constant 1 : index
    %c4_98 = arith.constant 4 : index
    %c512_99 = arith.constant 512 : index
    %261 = vector.load %arg2[%c1_97, %c4_98, %c512_99] : memref<2x64x640xf32, #tpu.memory_space<vmem>>, vector<1x1x32xf32>
    %262 = vector.shape_cast %261 : vector<1x1x32xf32> to vector<1x32xf32>
    %c1_100 = arith.constant 1 : index
    %c5_101 = arith.constant 5 : index
    %c512_102 = arith.constant 512 : index
    %263 = vector.load %arg2[%c1_100, %c5_101, %c512_102] : memref<2x64x640xf32, #tpu.memory_space<vmem>>, vector<1x1x32xf32>
    %264 = vector.shape_cast %263 : vector<1x1x32xf32> to vector<1x32xf32>
    %cst_103 = arith.constant dense<0.000000e+00> : vector<16xf32>
    %265 = vector.multi_reduction <add>, %260, %cst_103 [1] : vector<16x32xf32> to vector<16xf32>
    %266 = vector.shape_cast %265 : vector<16xf32> to vector<16x1xf32>
    %cst_104 = arith.constant 3.125000e-02 : f32
    %267 = vector.broadcast %cst_104 : f32 to vector<16x1xf32>
    %268 = arith.mulf %266, %267 : vector<16x1xf32>
    %269 = vector.broadcast %268 : vector<16x1xf32> to vector<16x32xf32>
    %270 = arith.subf %260, %269 : vector<16x32xf32>
    %271 = arith.mulf %270, %270 : vector<16x32xf32>
    %cst_105 = arith.constant dense<0.000000e+00> : vector<16xf32>
    %272 = vector.multi_reduction <add>, %271, %cst_105 [1] : vector<16x32xf32> to vector<16xf32>
    %273 = vector.shape_cast %272 : vector<16xf32> to vector<16x1xf32>
    %cst_106 = arith.constant 0.0322580636 : f32
    %274 = vector.broadcast %cst_106 : f32 to vector<16x1xf32>
    %275 = arith.mulf %273, %274 : vector<16x1xf32>
    %276 = math.sqrt %275 : vector<16x1xf32>
    %cst_107 = arith.constant 9.99999997E-7 : f32
    %277 = vector.broadcast %cst_107 : f32 to vector<16x1xf32>
    %278 = arith.addf %276, %277 : vector<16x1xf32>
    %279 = tpu.reciprocal %278 : vector<16x1xf32> -> vector<16x1xf32>
    %280 = vector.broadcast %279 : vector<16x1xf32> to vector<16x32xf32>
    %281 = arith.mulf %270, %280 : vector<16x32xf32>
    %282 = vector.broadcast %262 : vector<1x32xf32> to vector<16x32xf32>
    %283 = arith.mulf %281, %282 : vector<16x32xf32>
    %284 = vector.broadcast %264 : vector<1x32xf32> to vector<16x32xf32>
    %285 = arith.addf %283, %284 : vector<16x32xf32>
    %c1_108 = arith.constant 1 : index
    %c0_109 = arith.constant 0 : index
    %c0_110 = arith.constant 0 : index
    %286 = vector.load %arg2[%c1_108, %c0_109, %c0_110] : memref<2x64x640xf32, #tpu.memory_space<vmem>>, vector<1x32x96xf32>
    %287 = vector.shape_cast %286 : vector<1x32x96xf32> to vector<32x96xf32>
    %c1_111 = arith.constant 1 : index
    %c0_112 = arith.constant 0 : index
    %c512_113 = arith.constant 512 : index
    %288 = vector.load %arg2[%c1_111, %c0_112, %c512_113] : memref<2x64x640xf32, #tpu.memory_space<vmem>>, vector<1x1x96xf32>
    %289 = vector.shape_cast %288 : vector<1x1x96xf32> to vector<1x96xf32>
    %cst_114 = arith.constant dense<0.000000e+00> : vector<16x96xf32>
    %290 = tpu.matmul %285, %287, %cst_114 {dimension_numbers = #tpu.dot_dimension_numbers<[1], [0], [0], [1], [0, 0, 1, 1], [], []>} : vector<16x32xf32>, vector<32x96xf32>, vector<16x96xf32> -> vector<16x96xf32>
    %291 = vector.broadcast %289 : vector<1x96xf32> to vector<16x96xf32>
    %292 = arith.addf %290, %291 : vector<16x96xf32>
    %293 = vector.extract_strided_slice %292 {offsets = [0, 0], sizes = [8, 32], strides = [1, 1]} : vector<16x96xf32> to vector<8x32xf32>
    %294 = vector.extract_strided_slice %292 {offsets = [0, 32], sizes = [8, 32], strides = [1, 1]} : vector<16x96xf32> to vector<8x32xf32>
    %295 = vector.extract_strided_slice %292 {offsets = [0, 64], sizes = [8, 32], strides = [1, 1]} : vector<16x96xf32> to vector<8x32xf32>
    %296 = vector.extract_strided_slice %293 {offsets = [0, 0], sizes = [8, 8], strides = [1, 1]} : vector<8x32xf32> to vector<8x8xf32>
    %297 = vector.extract_strided_slice %294 {offsets = [0, 0], sizes = [8, 8], strides = [1, 1]} : vector<8x32xf32> to vector<8x8xf32>
    %298 = vector.extract_strided_slice %295 {offsets = [0, 0], sizes = [8, 8], strides = [1, 1]} : vector<8x32xf32> to vector<8x8xf32>
    %cst_115 = arith.constant dense<0.000000e+00> : vector<8x8xf32>
    %299 = tpu.matmul %296, %297, %cst_115 {dimension_numbers = #tpu.dot_dimension_numbers<[1], [1], [0], [0], [0, 0, 1, 0], [], []>} : vector<8x8xf32>, vector<8x8xf32>, vector<8x8xf32> -> vector<8x8xf32>
    %300 = vector.broadcast %2 : f32 to vector<8x8xf32>
    %301 = arith.mulf %299, %300 : vector<8x8xf32>
    %302 = arith.addf %301, %11 : vector<8x8xf32>
    %cst_116 = arith.constant dense<0xFF800000> : vector<8xf32>
    %303 = vector.multi_reduction <maximumf>, %302, %cst_116 [1] : vector<8x8xf32> to vector<8xf32>
    %304 = vector.shape_cast %303 : vector<8xf32> to vector<8x1xf32>
    %305 = vector.broadcast %304 : vector<8x1xf32> to vector<8x8xf32>
    %306 = arith.subf %302, %305 : vector<8x8xf32>
    %307 = math.exp %306 : vector<8x8xf32>
    %cst_117 = arith.constant dense<0.000000e+00> : vector<8xf32>
    %308 = vector.multi_reduction <add>, %307, %cst_117 [1] : vector<8x8xf32> to vector<8xf32>
    %309 = vector.shape_cast %308 : vector<8xf32> to vector<8x1xf32>
    %310 = tpu.reciprocal %309 : vector<8x1xf32> -> vector<8x1xf32>
    %311 = vector.broadcast %310 : vector<8x1xf32> to vector<8x8xf32>
    %312 = arith.mulf %307, %311 : vector<8x8xf32>
    %cst_118 = arith.constant dense<0.000000e+00> : vector<8x8xf32>
    %313 = tpu.matmul %312, %298, %cst_118 {dimension_numbers = #tpu.dot_dimension_numbers<[1], [0], [0], [1], [0, 0, 1, 1], [], []>} : vector<8x8xf32>, vector<8x8xf32>, vector<8x8xf32> -> vector<8x8xf32>
    %c0_119 = arith.constant 0 : index
    %c0_120 = arith.constant 0 : index
    %314 = vector.load %arg4[%c0_119, %c0_120] : memref<16x32xf32, #tpu.memory_space<vmem>>, vector<8x8xf32>
    tpu.vector_store %arg4[%c0_119, %c0_120], %313 {strides = array<i32>} : memref<16x32xf32, #tpu.memory_space<vmem>>, vector<8x8xf32>,
    %315 = vector.extract_strided_slice %293 {offsets = [0, 8], sizes = [8, 8], strides = [1, 1]} : vector<8x32xf32> to vector<8x8xf32>
    %316 = vector.extract_strided_slice %294 {offsets = [0, 8], sizes = [8, 8], strides = [1, 1]} : vector<8x32xf32> to vector<8x8xf32>
    %317 = vector.extract_strided_slice %295 {offsets = [0, 8], sizes = [8, 8], strides = [1, 1]} : vector<8x32xf32> to vector<8x8xf32>
    %cst_121 = arith.constant dense<0.000000e+00> : vector<8x8xf32>
    %318 = tpu.matmul %315, %316, %cst_121 {dimension_numbers = #tpu.dot_dimension_numbers<[1], [1], [0], [0], [0, 0, 1, 0], [], []>} : vector<8x8xf32>, vector<8x8xf32>, vector<8x8xf32> -> vector<8x8xf32>
    %319 = vector.broadcast %2 : f32 to vector<8x8xf32>
    %320 = arith.mulf %318, %319 : vector<8x8xf32>
    %321 = arith.addf %320, %11 : vector<8x8xf32>
    %cst_122 = arith.constant dense<0xFF800000> : vector<8xf32>
    %322 = vector.multi_reduction <maximumf>, %321, %cst_122 [1] : vector<8x8xf32> to vector<8xf32>
    %323 = vector.shape_cast %322 : vector<8xf32> to vector<8x1xf32>
    %324 = vector.broadcast %323 : vector<8x1xf32> to vector<8x8xf32>
    %325 = arith.subf %321, %324 : vector<8x8xf32>
    %326 = math.exp %325 : vector<8x8xf32>
    %cst_123 = arith.constant dense<0.000000e+00> : vector<8xf32>
    %327 = vector.multi_reduction <add>, %326, %cst_123 [1] : vector<8x8xf32> to vector<8xf32>
    %328 = vector.shape_cast %327 : vector<8xf32> to vector<8x1xf32>
    %329 = tpu.reciprocal %328 : vector<8x1xf32> -> vector<8x1xf32>
    %330 = vector.broadcast %329 : vector<8x1xf32> to vector<8x8xf32>
    %331 = arith.mulf %326, %330 : vector<8x8xf32>
    %cst_124 = arith.constant dense<0.000000e+00> : vector<8x8xf32>
    %332 = tpu.matmul %331, %317, %cst_124 {dimension_numbers = #tpu.dot_dimension_numbers<[1], [0], [0], [1], [0, 0, 1, 1], [], []>} : vector<8x8xf32>, vector<8x8xf32>, vector<8x8xf32> -> vector<8x8xf32>
    %c0_125 = arith.constant 0 : index
    %c8_126 = arith.constant 8 : index
    %333 = vector.load %arg4[%c0_125, %c8_126] : memref<16x32xf32, #tpu.memory_space<vmem>>, vector<8x8xf32>
    tpu.vector_store %arg4[%c0_125, %c8_126], %332 {strides = array<i32>} : memref<16x32xf32, #tpu.memory_space<vmem>>, vector<8x8xf32>,
    %334 = vector.extract_strided_slice %293 {offsets = [0, 16], sizes = [8, 8], strides = [1, 1]} : vector<8x32xf32> to vector<8x8xf32>
    %335 = vector.extract_strided_slice %294 {offsets = [0, 16], sizes = [8, 8], strides = [1, 1]} : vector<8x32xf32> to vector<8x8xf32>
    %336 = vector.extract_strided_slice %295 {offsets = [0, 16], sizes = [8, 8], strides = [1, 1]} : vector<8x32xf32> to vector<8x8xf32>
    %cst_127 = arith.constant dense<0.000000e+00> : vector<8x8xf32>
    %337 = tpu.matmul %334, %335, %cst_127 {dimension_numbers = #tpu.dot_dimension_numbers<[1], [1], [0], [0], [0, 0, 1, 0], [], []>} : vector<8x8xf32>, vector<8x8xf32>, vector<8x8xf32> -> vector<8x8xf32>
    %338 = vector.broadcast %2 : f32 to vector<8x8xf32>
    %339 = arith.mulf %337, %338 : vector<8x8xf32>
    %340 = arith.addf %339, %11 : vector<8x8xf32>
    %cst_128 = arith.constant dense<0xFF800000> : vector<8xf32>
    %341 = vector.multi_reduction <maximumf>, %340, %cst_128 [1] : vector<8x8xf32> to vector<8xf32>
    %342 = vector.shape_cast %341 : vector<8xf32> to vector<8x1xf32>
    %343 = vector.broadcast %342 : vector<8x1xf32> to vector<8x8xf32>
    %344 = arith.subf %340, %343 : vector<8x8xf32>
    %345 = math.exp %344 : vector<8x8xf32>
    %cst_129 = arith.constant dense<0.000000e+00> : vector<8xf32>
    %346 = vector.multi_reduction <add>, %345, %cst_129 [1] : vector<8x8xf32> to vector<8xf32>
    %347 = vector.shape_cast %346 : vector<8xf32> to vector<8x1xf32>
    %348 = tpu.reciprocal %347 : vector<8x1xf32> -> vector<8x1xf32>
    %349 = vector.broadcast %348 : vector<8x1xf32> to vector<8x8xf32>
    %350 = arith.mulf %345, %349 : vector<8x8xf32>
    %cst_130 = arith.constant dense<0.000000e+00> : vector<8x8xf32>
    %351 = tpu.matmul %350, %336, %cst_130 {dimension_numbers = #tpu.dot_dimension_numbers<[1], [0], [0], [1], [0, 0, 1, 1], [], []>} : vector<8x8xf32>, vector<8x8xf32>, vector<8x8xf32> -> vector<8x8xf32>
    %c0_131 = arith.constant 0 : index
    %c16_132 = arith.constant 16 : index
    %352 = vector.load %arg4[%c0_131, %c16_132] : memref<16x32xf32, #tpu.memory_space<vmem>>, vector<8x8xf32>
    tpu.vector_store %arg4[%c0_131, %c16_132], %351 {strides = array<i32>} : memref<16x32xf32, #tpu.memory_space<vmem>>, vector<8x8xf32>,
    %353 = vector.extract_strided_slice %293 {offsets = [0, 24], sizes = [8, 8], strides = [1, 1]} : vector<8x32xf32> to vector<8x8xf32>
    %354 = vector.extract_strided_slice %294 {offsets = [0, 24], sizes = [8, 8], strides = [1, 1]} : vector<8x32xf32> to vector<8x8xf32>
    %355 = vector.extract_strided_slice %295 {offsets = [0, 24], sizes = [8, 8], strides = [1, 1]} : vector<8x32xf32> to vector<8x8xf32>
    %cst_133 = arith.constant dense<0.000000e+00> : vector<8x8xf32>
    %356 = tpu.matmul %353, %354, %cst_133 {dimension_numbers = #tpu.dot_dimension_numbers<[1], [1], [0], [0], [0, 0, 1, 0], [], []>} : vector<8x8xf32>, vector<8x8xf32>, vector<8x8xf32> -> vector<8x8xf32>
    %357 = vector.broadcast %2 : f32 to vector<8x8xf32>
    %358 = arith.mulf %356, %357 : vector<8x8xf32>
    %359 = arith.addf %358, %11 : vector<8x8xf32>
    %cst_134 = arith.constant dense<0xFF800000> : vector<8xf32>
    %360 = vector.multi_reduction <maximumf>, %359, %cst_134 [1] : vector<8x8xf32> to vector<8xf32>
    %361 = vector.shape_cast %360 : vector<8xf32> to vector<8x1xf32>
    %362 = vector.broadcast %361 : vector<8x1xf32> to vector<8x8xf32>
    %363 = arith.subf %359, %362 : vector<8x8xf32>
    %364 = math.exp %363 : vector<8x8xf32>
    %cst_135 = arith.constant dense<0.000000e+00> : vector<8xf32>
    %365 = vector.multi_reduction <add>, %364, %cst_135 [1] : vector<8x8xf32> to vector<8xf32>
    %366 = vector.shape_cast %365 : vector<8xf32> to vector<8x1xf32>
    %367 = tpu.reciprocal %366 : vector<8x1xf32> -> vector<8x1xf32>
    %368 = vector.broadcast %367 : vector<8x1xf32> to vector<8x8xf32>
    %369 = arith.mulf %364, %368 : vector<8x8xf32>
    %cst_136 = arith.constant dense<0.000000e+00> : vector<8x8xf32>
    %370 = tpu.matmul %369, %355, %cst_136 {dimension_numbers = #tpu.dot_dimension_numbers<[1], [0], [0], [1], [0, 0, 1, 1], [], []>} : vector<8x8xf32>, vector<8x8xf32>, vector<8x8xf32> -> vector<8x8xf32>
    %c0_137 = arith.constant 0 : index
    %c24_138 = arith.constant 24 : index
    %371 = vector.load %arg4[%c0_137, %c24_138] : memref<16x32xf32, #tpu.memory_space<vmem>>, vector<8x8xf32>
    tpu.vector_store %arg4[%c0_137, %c24_138], %370 {strides = array<i32>} : memref<16x32xf32, #tpu.memory_space<vmem>>, vector<8x8xf32>,
    %372 = vector.extract_strided_slice %292 {offsets = [8, 0], sizes = [8, 32], strides = [1, 1]} : vector<16x96xf32> to vector<8x32xf32>
    %373 = vector.extract_strided_slice %292 {offsets = [8, 32], sizes = [8, 32], strides = [1, 1]} : vector<16x96xf32> to vector<8x32xf32>
    %374 = vector.extract_strided_slice %292 {offsets = [8, 64], sizes = [8, 32], strides = [1, 1]} : vector<16x96xf32> to vector<8x32xf32>
    %375 = vector.extract_strided_slice %372 {offsets = [0, 0], sizes = [8, 8], strides = [1, 1]} : vector<8x32xf32> to vector<8x8xf32>
    %376 = vector.extract_strided_slice %373 {offsets = [0, 0], sizes = [8, 8], strides = [1, 1]} : vector<8x32xf32> to vector<8x8xf32>
    %377 = vector.extract_strided_slice %374 {offsets = [0, 0], sizes = [8, 8], strides = [1, 1]} : vector<8x32xf32> to vector<8x8xf32>
    %cst_139 = arith.constant dense<0.000000e+00> : vector<8x8xf32>
    %378 = tpu.matmul %375, %376, %cst_139 {dimension_numbers = #tpu.dot_dimension_numbers<[1], [1], [0], [0], [0, 0, 1, 0], [], []>} : vector<8x8xf32>, vector<8x8xf32>, vector<8x8xf32> -> vector<8x8xf32>
    %379 = vector.broadcast %2 : f32 to vector<8x8xf32>
    %380 = arith.mulf %378, %379 : vector<8x8xf32>
    %381 = arith.addf %380, %19 : vector<8x8xf32>
    %cst_140 = arith.constant dense<0xFF800000> : vector<8xf32>
    %382 = vector.multi_reduction <maximumf>, %381, %cst_140 [1] : vector<8x8xf32> to vector<8xf32>
    %383 = vector.shape_cast %382 : vector<8xf32> to vector<8x1xf32>
    %384 = vector.broadcast %383 : vector<8x1xf32> to vector<8x8xf32>
    %385 = arith.subf %381, %384 : vector<8x8xf32>
    %386 = math.exp %385 : vector<8x8xf32>
    %cst_141 = arith.constant dense<0.000000e+00> : vector<8xf32>
    %387 = vector.multi_reduction <add>, %386, %cst_141 [1] : vector<8x8xf32> to vector<8xf32>
    %388 = vector.shape_cast %387 : vector<8xf32> to vector<8x1xf32>
    %389 = tpu.reciprocal %388 : vector<8x1xf32> -> vector<8x1xf32>
    %390 = vector.broadcast %389 : vector<8x1xf32> to vector<8x8xf32>
    %391 = arith.mulf %386, %390 : vector<8x8xf32>
    %cst_142 = arith.constant dense<0.000000e+00> : vector<8x8xf32>
    %392 = tpu.matmul %391, %377, %cst_142 {dimension_numbers = #tpu.dot_dimension_numbers<[1], [0], [0], [1], [0, 0, 1, 1], [], []>} : vector<8x8xf32>, vector<8x8xf32>, vector<8x8xf32> -> vector<8x8xf32>
    %c8_143 = arith.constant 8 : index
    %c0_144 = arith.constant 0 : index
    %393 = vector.load %arg4[%c8_143, %c0_144] : memref<16x32xf32, #tpu.memory_space<vmem>>, vector<8x8xf32>
    tpu.vector_store %arg4[%c8_143, %c0_144], %392 {strides = array<i32>} : memref<16x32xf32, #tpu.memory_space<vmem>>, vector<8x8xf32>,
    %394 = vector.extract_strided_slice %372 {offsets = [0, 8], sizes = [8, 8], strides = [1, 1]} : vector<8x32xf32> to vector<8x8xf32>
    %395 = vector.extract_strided_slice %373 {offsets = [0, 8], sizes = [8, 8], strides = [1, 1]} : vector<8x32xf32> to vector<8x8xf32>
    %396 = vector.extract_strided_slice %374 {offsets = [0, 8], sizes = [8, 8], strides = [1, 1]} : vector<8x32xf32> to vector<8x8xf32>
    %cst_145 = arith.constant dense<0.000000e+00> : vector<8x8xf32>
    %397 = tpu.matmul %394, %395, %cst_145 {dimension_numbers = #tpu.dot_dimension_numbers<[1], [1], [0], [0], [0, 0, 1, 0], [], []>} : vector<8x8xf32>, vector<8x8xf32>, vector<8x8xf32> -> vector<8x8xf32>
    %398 = vector.broadcast %2 : f32 to vector<8x8xf32>
    %399 = arith.mulf %397, %398 : vector<8x8xf32>
    %400 = arith.addf %399, %19 : vector<8x8xf32>
    %cst_146 = arith.constant dense<0xFF800000> : vector<8xf32>
    %401 = vector.multi_reduction <maximumf>, %400, %cst_146 [1] : vector<8x8xf32> to vector<8xf32>
    %402 = vector.shape_cast %401 : vector<8xf32> to vector<8x1xf32>
    %403 = vector.broadcast %402 : vector<8x1xf32> to vector<8x8xf32>
    %404 = arith.subf %400, %403 : vector<8x8xf32>
    %405 = math.exp %404 : vector<8x8xf32>
    %cst_147 = arith.constant dense<0.000000e+00> : vector<8xf32>
    %406 = vector.multi_reduction <add>, %405, %cst_147 [1] : vector<8x8xf32> to vector<8xf32>
    %407 = vector.shape_cast %406 : vector<8xf32> to vector<8x1xf32>
    %408 = tpu.reciprocal %407 : vector<8x1xf32> -> vector<8x1xf32>
    %409 = vector.broadcast %408 : vector<8x1xf32> to vector<8x8xf32>
    %410 = arith.mulf %405, %409 : vector<8x8xf32>
    %cst_148 = arith.constant dense<0.000000e+00> : vector<8x8xf32>
    %411 = tpu.matmul %410, %396, %cst_148 {dimension_numbers = #tpu.dot_dimension_numbers<[1], [0], [0], [1], [0, 0, 1, 1], [], []>} : vector<8x8xf32>, vector<8x8xf32>, vector<8x8xf32> -> vector<8x8xf32>
    %c8_149 = arith.constant 8 : index
    %c8_150 = arith.constant 8 : index
    %412 = vector.load %arg4[%c8_149, %c8_150] : memref<16x32xf32, #tpu.memory_space<vmem>>, vector<8x8xf32>
    tpu.vector_store %arg4[%c8_149, %c8_150], %411 {strides = array<i32>} : memref<16x32xf32, #tpu.memory_space<vmem>>, vector<8x8xf32>,
    %413 = vector.extract_strided_slice %372 {offsets = [0, 16], sizes = [8, 8], strides = [1, 1]} : vector<8x32xf32> to vector<8x8xf32>
    %414 = vector.extract_strided_slice %373 {offsets = [0, 16], sizes = [8, 8], strides = [1, 1]} : vector<8x32xf32> to vector<8x8xf32>
    %415 = vector.extract_strided_slice %374 {offsets = [0, 16], sizes = [8, 8], strides = [1, 1]} : vector<8x32xf32> to vector<8x8xf32>
    %cst_151 = arith.constant dense<0.000000e+00> : vector<8x8xf32>
    %416 = tpu.matmul %413, %414, %cst_151 {dimension_numbers = #tpu.dot_dimension_numbers<[1], [1], [0], [0], [0, 0, 1, 0], [], []>} : vector<8x8xf32>, vector<8x8xf32>, vector<8x8xf32> -> vector<8x8xf32>
    %417 = vector.broadcast %2 : f32 to vector<8x8xf32>
    %418 = arith.mulf %416, %417 : vector<8x8xf32>
    %419 = arith.addf %418, %19 : vector<8x8xf32>
    %cst_152 = arith.constant dense<0xFF800000> : vector<8xf32>
    %420 = vector.multi_reduction <maximumf>, %419, %cst_152 [1] : vector<8x8xf32> to vector<8xf32>
    %421 = vector.shape_cast %420 : vector<8xf32> to vector<8x1xf32>
    %422 = vector.broadcast %421 : vector<8x1xf32> to vector<8x8xf32>
    %423 = arith.subf %419, %422 : vector<8x8xf32>
    %424 = math.exp %423 : vector<8x8xf32>
    %cst_153 = arith.constant dense<0.000000e+00> : vector<8xf32>
    %425 = vector.multi_reduction <add>, %424, %cst_153 [1] : vector<8x8xf32> to vector<8xf32>
    %426 = vector.shape_cast %425 : vector<8xf32> to vector<8x1xf32>
    %427 = tpu.reciprocal %426 : vector<8x1xf32> -> vector<8x1xf32>
    %428 = vector.broadcast %427 : vector<8x1xf32> to vector<8x8xf32>
    %429 = arith.mulf %424, %428 : vector<8x8xf32>
    %cst_154 = arith.constant dense<0.000000e+00> : vector<8x8xf32>
    %430 = tpu.matmul %429, %415, %cst_154 {dimension_numbers = #tpu.dot_dimension_numbers<[1], [0], [0], [1], [0, 0, 1, 1], [], []>} : vector<8x8xf32>, vector<8x8xf32>, vector<8x8xf32> -> vector<8x8xf32>
    %c8_155 = arith.constant 8 : index
    %c16_156 = arith.constant 16 : index
    %431 = vector.load %arg4[%c8_155, %c16_156] : memref<16x32xf32, #tpu.memory_space<vmem>>, vector<8x8xf32>
    tpu.vector_store %arg4[%c8_155, %c16_156], %430 {strides = array<i32>} : memref<16x32xf32, #tpu.memory_space<vmem>>, vector<8x8xf32>,
    %432 = vector.extract_strided_slice %372 {offsets = [0, 24], sizes = [8, 8], strides = [1, 1]} : vector<8x32xf32> to vector<8x8xf32>
    %433 = vector.extract_strided_slice %373 {offsets = [0, 24], sizes = [8, 8], strides = [1, 1]} : vector<8x32xf32> to vector<8x8xf32>
    %434 = vector.extract_strided_slice %374 {offsets = [0, 24], sizes = [8, 8], strides = [1, 1]} : vector<8x32xf32> to vector<8x8xf32>
    %cst_157 = arith.constant dense<0.000000e+00> : vector<8x8xf32>
    %435 = tpu.matmul %432, %433, %cst_157 {dimension_numbers = #tpu.dot_dimension_numbers<[1], [1], [0], [0], [0, 0, 1, 0], [], []>} : vector<8x8xf32>, vector<8x8xf32>, vector<8x8xf32> -> vector<8x8xf32>
    %436 = vector.broadcast %2 : f32 to vector<8x8xf32>
    %437 = arith.mulf %435, %436 : vector<8x8xf32>
    %438 = arith.addf %437, %19 : vector<8x8xf32>
    %cst_158 = arith.constant dense<0xFF800000> : vector<8xf32>
    %439 = vector.multi_reduction <maximumf>, %438, %cst_158 [1] : vector<8x8xf32> to vector<8xf32>
    %440 = vector.shape_cast %439 : vector<8xf32> to vector<8x1xf32>
    %441 = vector.broadcast %440 : vector<8x1xf32> to vector<8x8xf32>
    %442 = arith.subf %438, %441 : vector<8x8xf32>
    %443 = math.exp %442 : vector<8x8xf32>
    %cst_159 = arith.constant dense<0.000000e+00> : vector<8xf32>
    %444 = vector.multi_reduction <add>, %443, %cst_159 [1] : vector<8x8xf32> to vector<8xf32>
    %445 = vector.shape_cast %444 : vector<8xf32> to vector<8x1xf32>
    %446 = tpu.reciprocal %445 : vector<8x1xf32> -> vector<8x1xf32>
    %447 = vector.broadcast %446 : vector<8x1xf32> to vector<8x8xf32>
    %448 = arith.mulf %443, %447 : vector<8x8xf32>
    %cst_160 = arith.constant dense<0.000000e+00> : vector<8x8xf32>
    %449 = tpu.matmul %448, %434, %cst_160 {dimension_numbers = #tpu.dot_dimension_numbers<[1], [0], [0], [1], [0, 0, 1, 1], [], []>} : vector<8x8xf32>, vector<8x8xf32>, vector<8x8xf32> -> vector<8x8xf32>
    %c8_161 = arith.constant 8 : index
    %c24_162 = arith.constant 24 : index
    %450 = vector.load %arg4[%c8_161, %c24_162] : memref<16x32xf32, #tpu.memory_space<vmem>>, vector<8x8xf32>
    tpu.vector_store %arg4[%c8_161, %c24_162], %449 {strides = array<i32>} : memref<16x32xf32, #tpu.memory_space<vmem>>, vector<8x8xf32>,
    %c0_163 = arith.constant 0 : index
    %c0_164 = arith.constant 0 : index
    %451 = vector.load %arg4[%c0_163, %c0_164] : memref<16x32xf32, #tpu.memory_space<vmem>>, vector<16x32xf32>
    %c1_165 = arith.constant 1 : index
    %c0_166 = arith.constant 0 : index
    %c128_167 = arith.constant 128 : index
    %452 = vector.load %arg2[%c1_165, %c0_166, %c128_167] : memref<2x64x640xf32, #tpu.memory_space<vmem>>, vector<1x32x32xf32>
    %453 = vector.shape_cast %452 : vector<1x32x32xf32> to vector<32x32xf32>
    %c1_168 = arith.constant 1 : index
    %c1_169 = arith.constant 1 : index
    %c512_170 = arith.constant 512 : index
    %454 = vector.load %arg2[%c1_168, %c1_169, %c512_170] : memref<2x64x640xf32, #tpu.memory_space<vmem>>, vector<1x1x32xf32>
    %455 = vector.shape_cast %454 : vector<1x1x32xf32> to vector<1x32xf32>
    %cst_171 = arith.constant dense<0.000000e+00> : vector<16x32xf32>
    %456 = tpu.matmul %451, %453, %cst_171 {dimension_numbers = #tpu.dot_dimension_numbers<[1], [0], [0], [1], [0, 0, 1, 1], [], []>} : vector<16x32xf32>, vector<32x32xf32>, vector<16x32xf32> -> vector<16x32xf32>
    %457 = arith.addf %260, %456 : vector<16x32xf32>
    %458 = vector.broadcast %455 : vector<1x32xf32> to vector<16x32xf32>
    %459 = arith.addf %457, %458 : vector<16x32xf32>
    %c1_172 = arith.constant 1 : index
    %c6_173 = arith.constant 6 : index
    %c512_174 = arith.constant 512 : index
    %460 = vector.load %arg2[%c1_172, %c6_173, %c512_174] : memref<2x64x640xf32, #tpu.memory_space<vmem>>, vector<1x1x32xf32>
    %461 = vector.shape_cast %460 : vector<1x1x32xf32> to vector<1x32xf32>
    %c1_175 = arith.constant 1 : index
    %c7_176 = arith.constant 7 : index
    %c512_177 = arith.constant 512 : index
    %462 = vector.load %arg2[%c1_175, %c7_176, %c512_177] : memref<2x64x640xf32, #tpu.memory_space<vmem>>, vector<1x1x32xf32>
    %463 = vector.shape_cast %462 : vector<1x1x32xf32> to vector<1x32xf32>
    %cst_178 = arith.constant dense<0.000000e+00> : vector<16xf32>
    %464 = vector.multi_reduction <add>, %459, %cst_178 [1] : vector<16x32xf32> to vector<16xf32>
    %465 = vector.shape_cast %464 : vector<16xf32> to vector<16x1xf32>
    %cst_179 = arith.constant 3.125000e-02 : f32
    %466 = vector.broadcast %cst_179 : f32 to vector<16x1xf32>
    %467 = arith.mulf %465, %466 : vector<16x1xf32>
    %468 = vector.broadcast %467 : vector<16x1xf32> to vector<16x32xf32>
    %469 = arith.subf %459, %468 : vector<16x32xf32>
    %470 = arith.mulf %469, %469 : vector<16x32xf32>
    %cst_180 = arith.constant dense<0.000000e+00> : vector<16xf32>
    %471 = vector.multi_reduction <add>, %470, %cst_180 [1] : vector<16x32xf32> to vector<16xf32>
    %472 = vector.shape_cast %471 : vector<16xf32> to vector<16x1xf32>
    %cst_181 = arith.constant 0.0322580636 : f32
    %473 = vector.broadcast %cst_181 : f32 to vector<16x1xf32>
    %474 = arith.mulf %472, %473 : vector<16x1xf32>
    %475 = math.sqrt %474 : vector<16x1xf32>
    %cst_182 = arith.constant 9.99999997E-7 : f32
    %476 = vector.broadcast %cst_182 : f32 to vector<16x1xf32>
    %477 = arith.addf %475, %476 : vector<16x1xf32>
    %478 = tpu.reciprocal %477 : vector<16x1xf32> -> vector<16x1xf32>
    %479 = vector.broadcast %478 : vector<16x1xf32> to vector<16x32xf32>
    %480 = arith.mulf %469, %479 : vector<16x32xf32>
    %481 = vector.broadcast %461 : vector<1x32xf32> to vector<16x32xf32>
    %482 = arith.mulf %480, %481 : vector<16x32xf32>
    %483 = vector.broadcast %463 : vector<1x32xf32> to vector<16x32xf32>
    %484 = arith.addf %482, %483 : vector<16x32xf32>
    %c1_183 = arith.constant 1 : index
    %c0_184 = arith.constant 0 : index
    %c256_185 = arith.constant 256 : index
    %485 = vector.load %arg2[%c1_183, %c0_184, %c256_185] : memref<2x64x640xf32, #tpu.memory_space<vmem>>, vector<1x32x64xf32>
    %486 = vector.shape_cast %485 : vector<1x32x64xf32> to vector<32x64xf32>
    %c1_186 = arith.constant 1 : index
    %c2_187 = arith.constant 2 : index
    %c512_188 = arith.constant 512 : index
    %487 = vector.load %arg2[%c1_186, %c2_187, %c512_188] : memref<2x64x640xf32, #tpu.memory_space<vmem>>, vector<1x1x64xf32>
    %488 = vector.shape_cast %487 : vector<1x1x64xf32> to vector<1x64xf32>
    %cst_189 = arith.constant dense<0.000000e+00> : vector<16x64xf32>
    %489 = tpu.matmul %484, %486, %cst_189 {dimension_numbers = #tpu.dot_dimension_numbers<[1], [0], [0], [1], [0, 0, 1, 1], [], []>} : vector<16x32xf32>, vector<32x64xf32>, vector<16x64xf32> -> vector<16x64xf32>
    %490 = vector.broadcast %488 : vector<1x64xf32> to vector<16x64xf32>
    %491 = arith.addf %489, %490 : vector<16x64xf32>
    %cst_190 = arith.constant 0.000000e+00 : f32
    %492 = vector.broadcast %cst_190 : f32 to vector<16x64xf32>
    %493 = arith.maximumf %491, %492 : vector<16x64xf32>
    %c1_191 = arith.constant 1 : index
    %c0_192 = arith.constant 0 : index
    %c384_193 = arith.constant 384 : index
    %494 = vector.load %arg2[%c1_191, %c0_192, %c384_193] : memref<2x64x640xf32, #tpu.memory_space<vmem>>, vector<1x64x32xf32>
    %495 = vector.shape_cast %494 : vector<1x64x32xf32> to vector<64x32xf32>
    %c1_194 = arith.constant 1 : index
    %c3_195 = arith.constant 3 : index
    %c512_196 = arith.constant 512 : index
    %496 = vector.load %arg2[%c1_194, %c3_195, %c512_196] : memref<2x64x640xf32, #tpu.memory_space<vmem>>, vector<1x1x32xf32>
    %497 = vector.shape_cast %496 : vector<1x1x32xf32> to vector<1x32xf32>
    %cst_197 = arith.constant dense<0.000000e+00> : vector<16x32xf32>
    %498 = tpu.matmul %493, %495, %cst_197 {dimension_numbers = #tpu.dot_dimension_numbers<[1], [0], [0], [1], [0, 0, 1, 1], [], []>} : vector<16x64xf32>, vector<64x32xf32>, vector<16x32xf32> -> vector<16x32xf32>
    %499 = arith.addf %459, %498 : vector<16x32xf32>
    %500 = vector.broadcast %497 : vector<1x32xf32> to vector<16x32xf32>
    %501 = arith.addf %499, %500 : vector<16x32xf32>
    %c0_198 = arith.constant 0 : index
    %c8_199 = arith.constant 8 : index
    %c512_200 = arith.constant 512 : index
    %502 = vector.load %arg2[%c0_198, %c8_199, %c512_200] : memref<2x64x640xf32, #tpu.memory_space<vmem>>, vector<1x1x32xf32>
    %503 = vector.shape_cast %502 : vector<1x1x32xf32> to vector<1x32xf32>
    %c0_201 = arith.constant 0 : index
    %c9 = arith.constant 9 : index
    %c512_202 = arith.constant 512 : index
    %504 = vector.load %arg2[%c0_201, %c9, %c512_202] : memref<2x64x640xf32, #tpu.memory_space<vmem>>, vector<1x1x32xf32>
    %505 = vector.shape_cast %504 : vector<1x1x32xf32> to vector<1x32xf32>
    %cst_203 = arith.constant dense<0.000000e+00> : vector<16xf32>
    %506 = vector.multi_reduction <add>, %501, %cst_203 [1] : vector<16x32xf32> to vector<16xf32>
    %507 = vector.shape_cast %506 : vector<16xf32> to vector<16x1xf32>
    %cst_204 = arith.constant 3.125000e-02 : f32
    %508 = vector.broadcast %cst_204 : f32 to vector<16x1xf32>
    %509 = arith.mulf %507, %508 : vector<16x1xf32>
    %510 = vector.broadcast %509 : vector<16x1xf32> to vector<16x32xf32>
    %511 = arith.subf %501, %510 : vector<16x32xf32>
    %512 = arith.mulf %511, %511 : vector<16x32xf32>
    %cst_205 = arith.constant dense<0.000000e+00> : vector<16xf32>
    %513 = vector.multi_reduction <add>, %512, %cst_205 [1] : vector<16x32xf32> to vector<16xf32>
    %514 = vector.shape_cast %513 : vector<16xf32> to vector<16x1xf32>
    %cst_206 = arith.constant 0.0322580636 : f32
    %515 = vector.broadcast %cst_206 : f32 to vector<16x1xf32>
    %516 = arith.mulf %514, %515 : vector<16x1xf32>
    %517 = math.sqrt %516 : vector<16x1xf32>
    %cst_207 = arith.constant 9.99999997E-7 : f32
    %518 = vector.broadcast %cst_207 : f32 to vector<16x1xf32>
    %519 = arith.addf %517, %518 : vector<16x1xf32>
    %520 = tpu.reciprocal %519 : vector<16x1xf32> -> vector<16x1xf32>
    %521 = vector.broadcast %520 : vector<16x1xf32> to vector<16x32xf32>
    %522 = arith.mulf %511, %521 : vector<16x32xf32>
    %523 = vector.broadcast %503 : vector<1x32xf32> to vector<16x32xf32>
    %524 = arith.mulf %522, %523 : vector<16x32xf32>
    %525 = vector.broadcast %505 : vector<1x32xf32> to vector<16x32xf32>
    %526 = arith.addf %524, %525 : vector<16x32xf32>
    %c0_208 = arith.constant 0 : index
    %c0_209 = arith.constant 0 : index
    %527 = vector.load %arg3[%c0_208, %c0_209] : memref<16x32xf32, #tpu.memory_space<vmem>>, vector<16x32xf32>
    tpu.vector_store %arg3[%c0_208, %c0_209], %526 {strides = array<i32>} : memref<16x32xf32, #tpu.memory_space<vmem>>, vector<16x32xf32>,
    return
  }
}

</mosaic_0001>

<bundles_post_ra>
// kernel: tpu_custom_call.1
= control target key start
LH: loop header
LB: loop body
LE: loop exit
PB: predicated region body
PF: predicated region fallthrough
CT: control target
= control target key end

     0   :  { %8 = vsyncpa [#allocation4], 0  ;;  %s5031_s0 = inlined_call_operand.hbm [shape: f32[16,32], index: 0, kind: input, shape index: {}]   ;;  %s5032_s1 = inlined_call_operand.vmem [shape: f32[2,8], index: 1, kind: input, shape index: {}]   ;;  %s5033_s2 = inlined_call_operand.hbm [shape: f32[2,64,640], index: 2, kind: input, shape index: {}]   ;;  %s5034_s3 = inlined_call_operand.hbm [shape: f32[16,32], index: 3, kind: output, shape index: {}]  }
   0x1   :  { %9 = vsyncpa [#allocation7], 0 }
   0x2   :  { %10 = vsyncpa [#allocation5], 0  ;;  %s4491_s12 = smov [#allocation3]   ;;  %s4419_s16 = scalar_lea.hbm %s5031_s0, 256 }
   0x3   :  { %s16_s13 = sshll.u32 %s4491_s12, 4  ;;  %p4420_p0 = scmp.ne.s32.totalorder %s5031_s0, %s4419_s16  ;;  %s17_s13 = int_to_ptr.vmem [resolvable:$true] %s16_s13 }
   0x4   :  { %p4423_p1 = scmp.lt.u32.totalorder %s4419_s16, %s5031_s0 }
   0x6   :  { %p4425_p2 = pnand %p4423_p1, %p4420_p0 }
   0x8   :  { %4428 = shalt.err (!%p4425_p2)
}
   0x9   :  { %s4429_s21 = scalar_lea.vmem %s17_s13, 256  ;;  %p4434_p4 = scmp.lt.s32.totalorder %s17_s13, %s17_s13 }
   0xa   :  { %p4430_p3 = scmp.ne.s32.totalorder %s17_s13, %s4429_s21  ;;  %p4435_p5 = scmp.lt.s32.totalorder %s4429_s21, %s4429_s21 }
   0xc   :  { %p4436_p6 = por %p4435_p5, %p4434_p4 }
   0xe   :  { %p4437_p7 = pnand %p4436_p6, %p4430_p3 }
  0x10   :  { %4440 = shalt.err (!%p4437_p7)
}
  0x11   :  { %s4492_s22 = smov 128   ;;  %s4493_s23 = smov 8  }
  0x12   :  { %22 = dma.hbm_to_vmem [thread:$0]  %s5031_s0, 256, %s17_s13, [#allocation4], %s4492_s22, %s4492_s22, %s4493_s23  }
  0x13   :  { %s4494_s26 = smov [#allocation6]   ;;  %s4441_s30 = scalar_lea.hbm %s5033_s2, 10240 }
  0x14   :  { %s30_s27 = sshll.u32 %s4494_s26, 4  ;;  %p4442_p8 = scmp.ne.s32.totalorder %s5033_s2, %s4441_s30  ;;  %s31_s27 = int_to_ptr.vmem [resolvable:$true] %s30_s27 }
  0x15   :  { %p4445_p9 = scmp.lt.u32.totalorder %s4441_s30, %s5033_s2 }
  0x17   :  { %p4447_p10 = pnand %p4445_p9, %p4442_p8 }
  0x19   :  { %4450 = shalt.err (!%p4447_p10)
}
  0x1a   :  { %s4451_s8 = scalar_lea.vmem %s31_s27, 10240  ;;  %p4456_p12 = scmp.lt.s32.totalorder %s31_s27, %s31_s27 }
  0x1b   :  { %p4452_p11 = scmp.ne.s32.totalorder %s31_s27, %s4451_s8  ;;  %p4457_p13 = scmp.lt.s32.totalorder %s4451_s8, %s4451_s8 }
  0x1d   :  { %p4458_p0 = por %p4457_p13, %p4456_p12 }
  0x1f   :  { %p4459_p1 = pnand %p4458_p0, %p4452_p11 }
  0x21   :  { %4462 = shalt.err (!%p4459_p1)
}
  0x22   :  { %s4495_s0 = smov 640   ;;  %s4496_s9 = smov 40  }
  0x23   :  { %36 = dma.hbm_to_vmem [thread:$0]  %s5033_s2, 10240, %s31_s27, [#allocation7], %s4495_s0, %s4495_s0, %s4496_s9  }
  0x24   :  { %4485 = dma.done.wait [#allocation4], 256  }
  0x25   :  { %4486 = vsyncadd [#allocation4], 4294967040 }
  0x26   :  { %4487 = dma.done.wait [#allocation7], 10240  }
  0x27   :  { %4488 = vsyncadd [#allocation7], 4294957056  ;;  %vm58_vm0 = vcmask 261120   ;;  %v4561_v0 = vld [vmem:[#allocation3] sm:$0xff]  ;;  %v4563_v1 = vld [vmem:[#allocation3 + $0x8] sm:$0xff]  ;;  %v4497_v46 = vmov 0.0  }
  0x28   :  { %v59_v2 = vsel %vm58_vm0, %v4561_v0, 0.0  ;;  %v62_v3 = vsel %vm58_vm0, %v4563_v1, 0.0  ;;  %v103_v14 = vld [vmem:[#allocation6] sm:$0xff]  ;;  %v104_v15 = vld [vmem:[#allocation6 + $0x28] sm:$0xff]  ;;  %v105_v16 = vld [vmem:[#allocation6 + $0x50] sm:$0xff]  ;;  %3970 = vmatprep.subr.mxu0 %v4497_v46  ;;  %vm4498_vm5 = vmmov 0  }
  0x29   :  { %60 = vadd.xlane.f32.xlu0 %v59_v2  ;;  %v4213_v17 = vpack.c.bf16 %v104_v15, %v103_v14  ;;  %v106_v18 = vld [vmem:[#allocation6 + $0x78] sm:$0xff]  ;;  %v56_v37 = vld [vmem:[#allocation6 + $0x24] ss:$0 sm:$0xff]  ;;  %v57_v39 = vld [vmem:[#allocation6 + $0x25] ss:$0 sm:$0xff]  ;;  %3972 = vmatprep.mubr.msk.f32.mxu0 %vm4498_vm5, %v4497_v46  ;;  %s4499_s2 = smov 88  }
  0x2a   :  { %v4217_v19 = vpack.c.bf16 %v106_v18, %v105_v16  ;;  %v107_v47 = vld [vmem:[#allocation6 + $0x20] ss:$0 sm:$0xff]  ;;  %s4500_s12 = smov 96   ;;  %s4501_s13 = smov 120   ;;  %vm192_vm6 = vcmask 64512   ;;  %vm528_vm8 = vcmask 130112  }
  0x2b   :  { %4214 = vmatprep.subr.bf16.mxu1 %v4213_v17  ;;  %s4502_s14 = smov 112   ;;  %s4503_s15 = smov 80   ;;  %vm701_vm9 = vcmask 195712   ;;  %vm874_vm10 = vcmask 261312   ;;  %vm1794_vm15 = vcmask 523264  }
  0x2c   :  { %4216 = vmatpush3.bf16.msra.mxu1 %v4213_v17  ;;  %s4504_s16 = smov 104   ;;  %s4505_s17 = smov 72  }
  0x2d   :  { %63 = vadd.xlane.f32.xlu0 %v62_v3  ;;  %4218 = vmatprep.subr.bf16.mxu1 %v4217_v19  ;;  %s4508_s20 = smov 48   ;;  %s4509_s21 = smov 56  }
  0x2e   :  { %s4510_s24 = smov 16   ;;  %s4511_s25 = smov 24  }
  0x2f   :  { %s4512_s26 = smov [#allocation8]  }
  0x30   :  { %4220 = vmatpush3.bf16.msra.mxu1 %v4217_v19  ;;  %s3752_s27 = sshll.u32 %s4512_s26, 4  ;;  %s3753_s27 = int_to_ptr.vmem [resolvable:$true] %s3752_s27 }
  0x31   :  { %3960 = vmatprep.subr.mxu1 %v4497_v46  ;;  %s4463_s28 = scalar_lea.vmem %s3753_s27, 256  ;;  %p4468_p3 = scmp.lt.s32.totalorder %s3753_s27, %s3753_s27 }
  0x32   :  { %p4464_p2 = scmp.ne.s32.totalorder %s3753_s27, %s4463_s28  ;;  %p4469_p4 = scmp.lt.s32.totalorder %s4463_s28, %s4463_s28 }
  0x34   :  { %p4470_p5 = por %p4469_p4, %p4468_p3 }
  0x36   :  { %p4471_p6 = pnand %p4470_p5, %p4464_p2 }
  0xb6   :  { %v61_v4 = vpop.xlane.xlu0 %60 }
  0xb7   :  { %v65_v5 = vmul.f32 0.03125, %v61_v4  ;;  %v48_v4 = vlaneseq }
  0xb9   :  { %v67_v6 = vsub.f32 %v4561_v0, %v65_v5  ;;  %v45_v5 = vld [vmem:[%s5032_s1] sm:$0x3]  ;;  %s4507_s1 = smov 64  }
  0xba   :  { %v64_v7 = vpop.xlane.xlu0 %63  ;;  %vm46_vm7 = vcmp.gt.f32.partialorder %v45_v5, 0.0 }
  0xbb   :  { %v66_v8 = vmul.f32 0.03125, %v64_v7  ;;  %v69_v9 = vmul.f32 %v67_v6, %v67_v6 }
  0xbd   :  { %v68_v10 = vsub.f32 %v4563_v1, %v66_v8  ;;  %v71_v11 = vsel %vm58_vm0, %v69_v9, 0.0  ;;  %v4506_v8 = vmov -1e+09  }
  0xbe   :  { %72 = vadd.xlane.f32.xlu1 %v71_v11  ;;  %v47_v9 = vsel %vm46_vm7, 0.0, %v4506_v8 }
  0xbf   :  { %v70_v12 = vmul.f32 %v68_v10, %v68_v10 }
  0xc1   :  { %v74_v13 = vsel %vm58_vm0, %v70_v12, 0.0 }
  0xc2   :  { %75 = vadd.xlane.f32.xlu1 %v74_v13 }
 0x14b   :  { %v73_v20 = vpop.xlane.xlu1 %72 }
 0x14c   :  { %v77_v21 = vmul.f32 0.032258064, %v73_v20 }
 0x14e   :  { %4315 = vrsqrt.f32 %v77_v21  ;;  %vm81_vm1 = vcmp.eq.f32.partialorder %v77_v21, inf  ;;  %v84_v26 = vand.u32 2147483648, %v77_v21  ;;  %vm83_vm2 = vcmp.eq.f32.partialorder %v77_v21, 0.0 }
 0x14f   :  { %v76_v22 = vpop.xlane.xlu1 %75 }
 0x150   :  { %v78_v23 = vmul.f32 0.032258064, %v76_v22 }
 0x152   :  { %4317 = vrsqrt.f32 %v78_v23  ;;  %vm88_vm3 = vcmp.eq.f32.partialorder %v78_v23, inf  ;;  %v91_v32 = vand.u32 2147483648, %v78_v23  ;;  %vm90_vm4 = vcmp.eq.f32.partialorder %v78_v23, 0.0 }
 0x158   :  { %v4316_v24 = vpop.eup %4315 }
 0x159   :  { %v80_v25 = vmul.f32 %v4316_v24, %v77_v21 }
 0x15b   :  { %v82_v27 = vsel %vm81_vm1, %v77_v21, %v80_v25 }
 0x15c   :  { %v4318_v28 = vpop.eup %4317  ;;  %v85_v29 = vsel %vm83_vm2, %v84_v26, %v82_v27 }
 0x15d   :  { %v87_v30 = vmul.f32 %v4318_v28, %v78_v23  ;;  %v93_v31 = vadd.f32 1e-06, %v85_v29 }
 0x15f   :  { %v89_v33 = vsel %vm88_vm3, %v78_v23, %v87_v30  ;;  %4319 = vrcp.f32 %v93_v31 }
 0x160   :  { %v92_v34 = vsel %vm90_vm4, %v91_v32, %v89_v33 }
 0x161   :  { %v94_v35 = vadd.f32 1e-06, %v92_v34 }
 0x163   :  { %4321 = vrcp.f32 %v94_v35 }
 0x169   :  { %v4320_v36 = vpop.eup %4319 }
 0x16a   :  { %v97_v38 = vmul.f32 %v4320_v36, %v67_v6  ;;  %v49_v6 = vshrl.u32 %v48_v4, 7 }
 0x16c   :  { %v99_v40 = vmul.f32 %v97_v38, %v56_v37  ;;  %v50_v7 = vsub.s32 0, %v49_v6  ;;  %v54_v25 = vsub.s32 1, %v49_v6 }
 0x16d   :  { %v4322_v41 = vpop.eup %4321 }
 0x16e   :  { %v98_v42 = vmul.f32 %v4322_v41, %v68_v10  ;;  %v101_v43 = vadd.f32 %v99_v40, %v57_v39  ;;  %v4655_v10 = vrot.slane %v47_v9, %v50_v7  ;;  %v4667_v31 = vrot.slane %v47_v9, %v54_v25 }
 0x170   :  { %v100_v44 = vmul.f32 %v98_v42, %v56_v37  ;;  %3957 = vmatprep.mubr.msk.f32.mxu1 %vm58_vm0, %v101_v43 }
 0x172   :  { %v102_v45 = vadd.f32 %v100_v44, %v57_v39 }
 0x174   :  { %3958 = vmatmul.mubr.msk.f32.vlgmr.msra.gmra.mrb[0].mxu1 %vm58_vm0, %v102_v45 }
 0x175   :  { %3962 = vmatprep.mubr.msk.f32.mxu1 %vm4498_vm5, %v4497_v46 }
 0x247   :  { %v3959_v48 = vpop.f32.mrb[0].mxu1 }
 0x248   :  { %v180_v49 = vpop.f32.mrb[1].mxu1  ;;  %v4595_v51 = vadd.f32 %v3959_v48, %v107_v47 }
 0x249   :  { %v4581_v50 = vadd.f32 %v180_v49, %v107_v47 }
 0x24b   :  { %359 = vrot.lane.b32.xlu1 %v4581_v50, %s4499_s2  ;;  %190 = vrot.lane.b32.xlu0 %v4581_v50, %s4500_s12 }
 0x24f   :  { %357 = vrot.lane.b32.xlu1 %v4581_v50, %s4501_s13  ;;  %530 = vrot.lane.b32.xlu0 %v4581_v50, %s4502_s14 }
 0x253   :  { %532 = vrot.lane.b32.xlu1 %v4581_v50, %s4503_s15  ;;  %703 = vrot.lane.b32.xlu0 %v4581_v50, %s4504_s16 }
 0x257   :  { %705 = vrot.lane.b32.xlu1 %v4581_v50, %s4505_s17  ;;  %1045 = vrot.lane.b32.xlu0 %v4595_v51, %s4499_s2 }
 0x25b   :  { %877 = vrot.lane.b32.xlu1 %v4595_v51, %s4500_s12  ;;  %1217 = vrot.lane.b32.xlu0 %v4595_v51, %s4503_s15 }
 0x25f   :  { %1043 = vrot.lane.b32.xlu1 %v4595_v51, %s4501_s13  ;;  %1389 = vrot.lane.b32.xlu0 %v4595_v51, %s4505_s17 }
 0x263   :  { %1215 = vrot.lane.b32.xlu1 %v4595_v51, %s4502_s14 }
 0x267   :  { %1387 = vrot.lane.b32.xlu1 %v4595_v51, %s4504_s16 }
 0x2bd   :  { %v360_v52 = vpop.permute.xlu1 %359  ;;  %v191_v53 = vpop.permute.xlu0 %190 }
 0x2be   :  { %3961 = vmatpush3.xpose.msk.msra.mxu1 %vm192_vm6, %v191_v53  ;;  %3971 = vmatpush3.xpose.msk.msra.mxu0 %vm192_vm6, %v360_v52 }
 0x2bf   :  { %3980 = vmatprep.subr.mxu0 %v4497_v46  ;;  %3965 = vmatprep.subr.mxu1 %v4497_v46 }
 0x2c1   :  { %v358_v54 = vpop.permute.xlu1 %357  ;;  %3963 = vmatmul.mubr.msk.f32.vlgmr.msra.gmra.mrb[2].mxu1 %vm192_vm6, %v4581_v50  ;;  %v531_v55 = vpop.permute.xlu0 %530 }
 0x2c2   :  { %3973 = vmatmul.mubr.msk.f32.vlgmr.msra.gmra.mrb[0].mxu0 %vm192_vm6, %v358_v54  ;;  %3967 = vmatprep.mubr.msk.f32.mxu1 %vm4498_vm5, %v4497_v46 }
 0x2c3   :  { %3982 = vmatprep.mubr.msk.f32.mxu0 %vm4498_vm5, %v4497_v46 }
 0x2c5   :  { %v533_v56 = vpop.permute.xlu1 %532  ;;  %v704_v57 = vpop.permute.xlu0 %703 }
 0x2c6   :  { %3981 = vmatpush3.xpose.msk.msra.mxu0 %vm192_vm6, %v533_v56 }
 0x2c7   :  { %3990 = vmatprep.subr.mxu0 %v4497_v46 }
 0x2c9   :  { %v706_v58 = vpop.permute.xlu1 %705  ;;  %3983 = vmatmul.mubr.msk.f32.vlgmr.msra.gmra.mrb[2].mxu0 %vm192_vm6, %v531_v55  ;;  %v1046_v59 = vpop.permute.xlu0 %1045 }
 0x2ca   :  { %3991 = vmatpush3.xpose.msk.msra.mxu0 %vm192_vm6, %v706_v58  ;;  %3992 = vmatprep.mubr.msk.f32.mxu0 %vm4498_vm5, %v4497_v46 }
 0x2cb   :  { %4000 = vmatprep.subr.mxu0 %v4497_v46 }
 0x2cd   :  { %v878_v60 = vpop.permute.xlu1 %877  ;;  %3993 = vmatmul.mubr.msk.f32.vlgmr.msra.gmra.mrb[4].mxu0 %vm192_vm6, %v704_v57  ;;  %v1218_v62 = vpop.permute.xlu0 %1217 }
 0x2ce   :  { %4001 = vmatpush3.xpose.msk.msra.mxu0 %vm192_vm6, %v878_v60  ;;  %4002 = vmatprep.mubr.msk.f32.mxu0 %vm4498_vm5, %v4497_v46 }
 0x2cf   :  { %4010 = vmatprep.subr.mxu0 %v4497_v46 }
 0x2d1   :  { %v1044_v61 = vpop.permute.xlu1 %1043  ;;  %4003 = vmatmul.mubr.msk.f32.vlgmr.msra.gmra.mrb[6].mxu0 %vm192_vm6, %v4595_v51  ;;  %v1390_v2 = vpop.permute.xlu0 %1389 }
 0x2d2   :  { %4011 = vmatpush3.xpose.msk.msra.mxu0 %vm192_vm6, %v1046_v59  ;;  %4012 = vmatprep.mubr.msk.f32.mxu0 %vm4498_vm5, %v4497_v46 }
 0x2d3   :  { %4020 = vmatprep.subr.mxu0 %v4497_v46 }
 0x2d5   :  { %4013 = vmatmul.mubr.msk.f32.vlgmr.msra.gmra.mrb[8].mxu0 %vm192_vm6, %v1044_v61  ;;  %v1216_v63 = vpop.permute.xlu1 %1215 }
 0x2d6   :  { %4021 = vmatpush3.xpose.msk.msra.mxu0 %vm192_vm6, %v1218_v62  ;;  %4022 = vmatprep.mubr.msk.f32.mxu0 %vm4498_vm5, %v4497_v46 }
 0x2d7   :  { %4030 = vmatprep.subr.mxu0 %v4497_v46 }
 0x2d9   :  { %4023 = vmatmul.mubr.msk.f32.vlgmr.msra.gmra.mrb[10].mxu0 %vm192_vm6, %v1216_v63  ;;  %v1388_v3 = vpop.permute.xlu1 %1387 }
 0x2da   :  { %4031 = vmatpush3.xpose.msk.msra.mxu0 %vm192_vm6, %v1390_v2  ;;  %4032 = vmatprep.mubr.msk.f32.mxu0 %vm4498_vm5, %v4497_v46 }
 0x2dd   :  { %4033 = vmatmul.mubr.msk.f32.vlgmr.msra.gmra.mrb[12].mxu0 %vm192_vm6, %v1388_v3 }
 0x394   :  { %v263_v11 = vpop.f32.mrb[2].mxu1 }
 0x395   :  { %v267_v12 = vmul.f32 0.35355338, %v263_v11  ;;  %v3964_v13 = vpop.f32.mrb[3].mxu1  ;;  %v431_v14 = vpop.f32.mrb[0].mxu0 }
 0x396   :  { %v435_v15 = vmul.f32 0.35355338, %v431_v14  ;;  %v3974_v16 = vpop.f32.mrb[1].mxu0 }
 0x397   :  { %v268_v17 = vadd.f32 %v267_v12, %v4655_v10 }
 0x398   :  { %v436_v18 = vadd.f32 %v435_v15, %v4655_v10 }
 0x399   :  { %v269_v19 = vsel %vm192_vm6, %v268_v17, -inf }
 0x39a   :  { %270 = vmax.xlane.f32.xlu0 %v269_v19  ;;  %v437_v20 = vsel %vm192_vm6, %v436_v18, -inf }
 0x39b   :  { %438 = vmax.xlane.f32.xlu1 %v437_v20 }
 0x39c   :  { %v604_v21 = vpop.f32.mrb[2].mxu0 }
 0x39d   :  { %v608_v22 = vmul.f32 0.35355338, %v604_v21  ;;  %v3984_v23 = vpop.f32.mrb[3].mxu0 }
 0x39f   :  { %v4662_v24 = vadd.f32 %v608_v22, %v4655_v10 }
 0x3a0   :  { %v777_v26 = vpop.f32.mrb[4].mxu0 }
 0x3a1   :  { %v781_v27 = vmul.f32 0.35355338, %v777_v26  ;;  %v3994_v28 = vpop.f32.mrb[5].mxu0  ;;  %v610_v29 = vsel %vm192_vm6, %v4662_v24, -inf }
 0x3a2   :  { %611 = vmax.xlane.f32.xlu0 %v610_v29 }
 0x3a3   :  { %v782_v30 = vadd.f32 %v781_v27, %v4655_v10 }
 0x3a4   :  { %v949_v32 = vpop.f32.mrb[6].mxu0 }
 0x3a5   :  { %v953_v33 = vmul.f32 0.35355338, %v949_v32  ;;  %v4004_v34 = vpop.f32.mrb[7].mxu0  ;;  %v783_v35 = vsel %vm192_vm6, %v782_v30, -inf }
 0x3a6   :  { %784 = vmax.xlane.f32.xlu0 %v783_v35 }
 0x3a7   :  { %v954_v36 = vadd.f32 %v953_v33, %v4667_v31 }
 0x3a8   :  { %v1117_v37 = vpop.f32.mrb[8].mxu0 }
 0x3a9   :  { %v1121_v38 = vmul.f32 0.35355338, %v1117_v37  ;;  %v4014_v39 = vpop.f32.mrb[9].mxu0  ;;  %v955_v40 = vsel %vm192_vm6, %v954_v36, -inf }
 0x3aa   :  { %956 = vmax.xlane.f32.xlu0 %v955_v40 }
 0x3ab   :  { %v1122_v41 = vadd.f32 %v1121_v38, %v4667_v31 }
 0x3ac   :  { %v1289_v42 = vpop.f32.mrb[10].mxu0 }
 0x3ad   :  { %v1293_v43 = vmul.f32 0.35355338, %v1289_v42  ;;  %v4024_v44 = vpop.f32.mrb[11].mxu0  ;;  %v1123_v45 = vsel %vm192_vm6, %v1122_v41, -inf }
 0x3ae   :  { %1124 = vmax.xlane.f32.xlu1 %v1123_v45 }
 0x3af   :  { %v1294_v47 = vadd.f32 %v1293_v43, %v4667_v31 }
 0x3b0   :  { %v1461_v48 = vpop.f32.mrb[12].mxu0 }
 0x3b1   :  { %v4034_v49 = vpop.f32.mrb[13].mxu0  ;;  %v1295_v52 = vsel %vm192_vm6, %v1294_v47, -inf  ;;  %v1465_v53 = vmul.f32 0.35355338, %v1461_v48 }
 0x3b2   :  { %1296 = vmax.xlane.f32.xlu0 %v1295_v52 }
 0x3b3   :  { %v1466_v54 = vadd.f32 %v1465_v53, %v4667_v31 }
 0x3b5   :  { %v1467_v55 = vsel %vm192_vm6, %v1466_v54, -inf }
 0x3bf   :  { %280 = vrot.lane.b32.xlu1 %v4581_v50, %s4507_s1 }
 0x3e3   :  { %1468 = vmax.xlane.f32.xlu1 %v1467_v55 }
 0x3f4   :  { %621 = vrot.lane.b32.xlu1 %v4581_v50, %s4508_s20 }
 0x3f8   :  { %794 = vrot.lane.b32.xlu1 %v4581_v50, %s4496_s9 }
 0x3fc   :  { %966 = vrot.lane.b32.xlu1 %v4595_v51, %s4507_s1 }
 0x427   :  { %v271_v56 = vpop.xlane.xlu0 %270 }
 0x428   :  { %v272_v57 = vsub.f32 %v268_v17, %v271_v56  ;;  %v439_v58 = vpop.xlane.xlu1 %438 }
 0x429   :  { %v440_v59 = vsub.f32 %v436_v18, %v439_v58 }
 0x42a   :  { %v273_v60 = vmul.f32 1.442695, %v272_v57 }
 0x42b   :  { %v441_v61 = vmul.f32 1.442695, %v440_v59 }
 0x42c   :  { %4323 = vpow2.f32 %v273_v60 }
 0x42d   :  { %4325 = vpow2.f32 %v441_v61 }
 0x42f   :  { %v612_v62 = vpop.xlane.xlu0 %611 }
 0x430   :  { %v613_v13 = vsub.f32 %v4662_v24, %v612_v62 }
 0x432   :  { %v614_v15 = vmul.f32 1.442695, %v613_v13 }
 0x433   :  { %v785_v63 = vpop.xlane.xlu0 %784 }
 0x434   :  { %v786_v2 = vsub.f32 %v782_v30, %v785_v63 }
 0x436   :  { %v4324_v3 = vpop.eup %4323  ;;  %v787_v4 = vmul.f32 1.442695, %v786_v2 }
 0x437   :  { %v4686_v5 = vpop.eup %4325  ;;  %v275_v6 = vsel %vm192_vm6, %v4324_v3, 0.0  ;;  %v957_v14 = vpop.xlane.xlu0 %956 }
 0x438   :  { %4327 = vpow2.f32 %v787_v4  ;;  %276 = vadd.xlane.f32.xlu0 %v275_v6  ;;  %v443_v7 = vsel %vm192_vm6, %v4686_v5, 0.0  ;;  %v958_v16 = vsub.f32 %v954_v36, %v957_v14 }
 0x439   :  { %444 = vadd.xlane.f32.xlu1 %v443_v7  ;;  %4329 = vpow2.f32 %v614_v15 }
 0x43a   :  { %v959_v18 = vmul.f32 1.442695, %v958_v16  ;;  %v1561_v16 = vld [vmem:[#allocation6 + $0x8] sm:$0xff] }
 0x43b   :  { %v1125_v8 = vpop.xlane.xlu1 %1124 }
 0x43c   :  { %4331 = vpow2.f32 %v959_v18  ;;  %v1126_v20 = vsub.f32 %v1122_v41, %v1125_v8 }
 0x43e   :  { %v1127_v22 = vmul.f32 1.442695, %v1126_v20  ;;  %v1563_v20 = vld [vmem:[#allocation6 + $0x58] sm:$0xff] }
 0x43f   :  { %v281_v9 = vpop.permute.xlu1 %280  ;;  %v1297_v17 = vpop.xlane.xlu0 %1296 }
 0x440   :  { %3966 = vmatpush3.msra.mxu1 %v281_v9  ;;  %v1298_v19 = vsub.f32 %v1294_v47, %v1297_v17  ;;  %v1562_v17 = vld [vmem:[#allocation6 + $0x30] sm:$0xff] }
 0x441   :  { %3975 = vmatprep.subr.mxu1 %v4497_v46  ;;  %v4221_v18 = vpack.c.bf16 %v1562_v17, %v1561_v16 }
 0x442   :  { %v4692_v11 = vpop.eup %4327  ;;  %v1299_v21 = vmul.f32 1.442695, %v1298_v19 }
 0x443   :  { %v789_v12 = vsel %vm192_vm6, %v4692_v11, 0.0  ;;  %v4330_v23 = vpop.eup %4329  ;;  %4222 = vmatprep.subr.bf16.mxu0 %v4221_v18 }
 0x444   :  { %790 = vadd.xlane.f32.xlu1 %v789_v12  ;;  %4333 = vpow2.f32 %v1299_v21  ;;  %v1564_v21 = vld [vmem:[#allocation6 + $0x80] sm:$0xff]  ;;  %4224 = vmatpush3.bf16.msra.mxu0 %v4221_v18 }
 0x445   :  { %4335 = vpow2.f32 %v1127_v22 }
 0x446   :  { %v4332_v25 = vpop.eup %4331 }
 0x447   :  { %v961_v24 = vsel %vm192_vm6, %v4332_v25, 0.0 }
 0x44e   :  { %448 = vrot.lane.b32.xlu0 %v4581_v50, %s4509_s21  ;;  %v616_v50 = vsel %vm192_vm6, %v4330_v23, 0.0  ;;  %v4703_v27 = vpop.eup %4333 }
 0x44f   :  { %v1301_v30 = vsel %vm192_vm6, %v4703_v27, 0.0  ;;  %v4336_v32 = vpop.eup %4335 }
 0x450   :  { %v1129_v33 = vsel %vm192_vm6, %v4336_v32, 0.0 }
 0x455   :  { %1134 = vrot.lane.b32.xlu1 %v4595_v51, %s4509_s21 }
 0x46d   :  { %617 = vadd.xlane.f32.xlu0 %v616_v50 }
 0x470   :  { %v1469_v26 = vpop.xlane.xlu1 %1468 }
 0x471   :  { %v1470_v28 = vsub.f32 %v1466_v54, %v1469_v26  ;;  %962 = vadd.xlane.f32.xlu0 %v961_v24 }
 0x473   :  { %v1471_v29 = vmul.f32 1.442695, %v1470_v28 }
 0x474   :  { %v622_v36 = vpop.permute.xlu1 %621 }
 0x475   :  { %4337 = vpow2.f32 %v1471_v29  ;;  %1302 = vadd.xlane.f32.xlu0 %v1301_v30 }
 0x478   :  { %v795_v37 = vpop.permute.xlu1 %794 }
 0x479   :  { %1130 = vadd.xlane.f32.xlu1 %v1129_v33 }
 0x47c   :  { %v967_v38 = vpop.permute.xlu1 %966 }
 0x47f   :  { %v4708_v34 = vpop.eup %4337 }
 0x480   :  { %v1473_v35 = vsel %vm192_vm6, %v4708_v34, 0.0 }
 0x481   :  { %1474 = vadd.xlane.f32.xlu0 %v1473_v35 }
 0x48a   :  { %1478 = vrot.lane.b32.xlu1 %v4595_v51, %s4496_s9 }
 0x497   :  { %1306 = vrot.lane.b32.xlu0 %v4595_v51, %s4508_s20 }
 0x4c5   :  { %v277_v39 = vpop.xlane.xlu0 %276 }
 0x4c6   :  { %4339 = vrcp.f32 %v277_v39  ;;  %v445_v40 = vpop.xlane.xlu1 %444 }
 0x4c7   :  { %4341 = vrcp.f32 %v445_v40 }
 0x4c9   :  { %v449_v44 = vpop.permute.xlu0 %448 }
 0x4d0   :  { %v4340_v41 = vpop.eup %4339 }
 0x4d1   :  { %v279_v42 = vmul.f32 %v4340_v41, %v4324_v3  ;;  %v4342_v43 = vpop.eup %4341  ;;  %v791_v51 = vpop.xlane.xlu1 %790 }
 0x4d2   :  { %v447_v45 = vmul.f32 %v4342_v43, %v4686_v5 }
 0x4d3   :  { %3968 = vmatmul.mubr.msk.f32.vlgmr.msra.gmra.mrb[4].mxu1 %vm192_vm6, %v279_v42 }
 0x4d4   :  { %3976 = vmatpush3.msra.mxu1 %v449_v44  ;;  %3977 = vmatprep.mubr.msk.f32.mxu1 %vm4498_vm5, %v4497_v46 }
 0x4d5   :  { %3985 = vmatprep.subr.mxu1 %v4497_v46  ;;  %v1135_v49 = vpop.permute.xlu1 %1134 }
 0x4d7   :  { %3978 = vmatmul.mubr.msk.f32.vlgmr.msra.gmra.mrb[6].mxu1 %vm192_vm6, %v447_v45 }
 0x4d8   :  { %3986 = vmatpush3.msra.mxu1 %v622_v36  ;;  %3987 = vmatprep.mubr.msk.f32.mxu1 %vm4498_vm5, %v4497_v46 }
 0x4d9   :  { %3995 = vmatprep.subr.mxu1 %v4497_v46 }
 0x4fa   :  { %v618_v47 = vpop.xlane.xlu0 %617 }
 0x4fb   :  { %4343 = vrcp.f32 %v618_v47 }
 0x4fc   :  { %4345 = vrcp.f32 %v791_v51 }
 0x4fe   :  { %v963_v48 = vpop.xlane.xlu0 %962 }
 0x4ff   :  { %4347 = vrcp.f32 %v963_v48 }
 0x502   :  { %v1303_v54 = vpop.xlane.xlu0 %1302 }
 0x505   :  { %v4344_v52 = vpop.eup %4343 }
 0x506   :  { %v620_v53 = vmul.f32 %v4344_v52, %v4330_v23  ;;  %v1131_v55 = vpop.xlane.xlu1 %1130  ;;  %v4346_v56 = vpop.eup %4345  ;;  %v4225_v23 = vpack.c.bf16 %v1564_v21, %v1563_v20 }
 0x507   :  { %4349 = vrcp.f32 %v1131_v55  ;;  %v793_v57 = vmul.f32 %v4346_v56, %v4692_v11 }
 0x508   :  { %3988 = vmatmul.mubr.msk.f32.vlgmr.msra.gmra.mrb[8].mxu1 %vm192_vm6, %v620_v53  ;;  %4351 = vrcp.f32 %v1303_v54  ;;  %4226 = vmatprep.subr.bf16.mxu0 %v4225_v23 }
 0x509   :  { %3996 = vmatpush3.msra.mxu1 %v795_v37  ;;  %3997 = vmatprep.mubr.msk.f32.mxu1 %vm4498_vm5, %v4497_v46  ;;  %v4348_v58 = vpop.eup %4347 }
 0x50a   :  { %4005 = vmatprep.subr.mxu1 %v4497_v46  ;;  %v965_v59 = vmul.f32 %v4348_v58, %v4332_v25  ;;  %v1479_v4 = vpop.permute.xlu1 %1478  ;;  %4228 = vmatpush3.bf16.msra.mxu0 %v4225_v23  ;;  %v1698_v58 = vld [vmem:[#allocation6 + $0x38] sm:$0xff] }
 0x50c   :  { %3998 = vmatmul.mubr.msk.f32.vlgmr.msra.gmra.mrb[10].mxu1 %vm192_vm6, %v793_v57  ;;  %v1697_v57 = vld [vmem:[#allocation6 + $0x10] sm:$0xff] }
 0x50d   :  { %4006 = vmatpush3.msra.mxu1 %v967_v38  ;;  %4007 = vmatprep.mubr.msk.f32.mxu1 %vm4498_vm5, %v4497_v46  ;;  %v1565_v38 = vld [vmem:[#allocation6 + $0x21] ss:$0 sm:$0xff] }
 0x50e   :  { %v1475_v60 = vpop.xlane.xlu0 %1474  ;;  %4015 = vmatprep.subr.mxu1 %v4497_v46 }
 0x50f   :  { %4353 = vrcp.f32 %v1475_v60  ;;  %v4229_v60 = vpack.c.bf16 %v1698_v58, %v1697_v57 }
 0x510   :  { %4008 = vmatmul.mubr.msk.f32.vlgmr.msra.gmra.mrb[12].mxu1 %vm192_vm6, %v965_v59  ;;  %v1699_v59 = vld [vmem:[#allocation6 + $0x60] sm:$0xff] }
 0x511   :  { %v4350_v61 = vpop.eup %4349  ;;  %4016 = vmatpush3.msra.mxu1 %v1135_v49  ;;  %4017 = vmatprep.mubr.msk.f32.mxu1 %vm4498_vm5, %v4497_v46 }
 0x512   :  { %v1133_v62 = vmul.f32 %v4350_v61, %v4336_v32  ;;  %v1307_v63 = vpop.permute.xlu0 %1306  ;;  %4025 = vmatprep.subr.mxu1 %v4497_v46  ;;  %v4352_v2 = vpop.eup %4351  ;;  %v1700_v61 = vld [vmem:[#allocation6 + $0x88] sm:$0xff] }
 0x513   :  { %v1305_v3 = vmul.f32 %v4352_v2, %v4703_v27  ;;  %v1786_v2 = vld [vmem:[#allocation6 + $0x40] sm:$0xff] }
 0x514   :  { %4018 = vmatmul.mubr.msk.f32.vlgmr.msra.gmra.mrb[14].mxu1 %vm192_vm6, %v1133_v62  ;;  %v4233_v62 = vpack.c.bf16 %v1700_v61, %v1699_v59 }
 0x515   :  { %4026 = vmatpush3.msra.mxu1 %v1307_v63  ;;  %4027 = vmatprep.mubr.msk.f32.mxu1 %vm4498_vm5, %v4497_v46  ;;  %v1785_v63 = vld [vmem:[#allocation6 + $0x18] sm:$0xff] }
 0x516   :  { %4035 = vmatprep.subr.mxu1 %v4497_v46 }
 0x518   :  { %4028 = vmatmul.mubr.msk.f32.vlgmr.msra.gmra.mrb[16].mxu1 %vm192_vm6, %v1305_v3  ;;  %v1787_v3 = vld [vmem:[#allocation6 + $0x68] sm:$0xff] }
 0x519   :  { %v4354_v5 = vpop.eup %4353  ;;  %4036 = vmatpush3.msra.mxu1 %v1479_v4  ;;  %4037 = vmatprep.mubr.msk.f32.mxu1 %vm4498_vm5, %v4497_v46  ;;  %v4237_v4 = vpack.c.bf16 %v1786_v2, %v1785_v63 }
 0x51a   :  { %v1477_v6 = vmul.f32 %v4354_v5, %v4708_v34  ;;  %4230 = vmatprep.subr.bf16.mxu1 %v4229_v60  ;;  %v1788_v5 = vld [vmem:[#allocation6 + $0x90] sm:$0xff] }
 0x51b   :  { %4238 = vmatprep.subr.bf16.mxu0 %v4237_v4 }
 0x51c   :  { %4038 = vmatmul.mubr.msk.f32.vlgmr.msra.gmra.mrb[18].mxu1 %vm192_vm6, %v1477_v6  ;;  %v4241_v6 = vpack.c.bf16 %v1788_v5, %v1787_v3  ;;  %v1928_v5 = vld [vmem:[#allocation6 + $0x168] sm:$0xff] }
 0x51d   :  { %4232 = vmatpush3.bf16.msra.mxu1 %v4229_v60 }
 0x51e   :  { %4234 = vmatprep.subr.bf16.mxu1 %v4233_v62 }
 0x521   :  { %4236 = vmatpush3.bf16.msra.mxu1 %v4233_v62 }
 0x5a6   :  { %v352_v7 = vpop.f32.mrb[4].mxu1 }
 0x5a7   :  { %356 = vst.msk [vmem:[#allocation2] sm:$0xff] %vm192_vm6, %v352_v7  ;;  %v3969_v8 = vpop.f32.mrb[5].mxu1  ;;  %v1789_v7 = vld [vmem:[#allocation6 + $0xb8] sm:$0xff] }
 0x5a8   :  { %v1790_v8 = vld [vmem:[#allocation6 + $0xe0] sm:$0xff] }
 0x5aa   :  { %v520_v9 = vpop.f32.mrb[6].mxu1 }
 0x5ab   :  { %525 = vrot.lane.b32.xlu0 %v520_v9, %s4493_s23  ;;  %v3979_v11 = vpop.f32.mrb[7].mxu1  ;;  %v4245_v9 = vpack.c.bf16 %v1790_v8, %v1789_v7  ;;  %v1930_v8 = vld [vmem:[#allocation6 + $0x1b8] sm:$0xff] }
 0x5db   :  { %v693_v12 = vpop.f32.mrb[8].mxu1 }
 0x5dc   :  { %698 = vrot.lane.b32.xlu1 %v693_v12, %s4510_s24  ;;  %v3989_v13 = vpop.f32.mrb[9].mxu1 }
 0x5df   :  { %v866_v14 = vpop.f32.mrb[10].mxu1 }
 0x5e0   :  { %871 = vrot.lane.b32.xlu1 %v866_v14, %s4511_s25  ;;  %v3999_v15 = vpop.f32.mrb[11].mxu1 }
 0x5e3   :  { %v1038_v19 = vpop.f32.mrb[12].mxu1 }
 0x5e4   :  { %1042 = vst.msk [vmem:[#allocation2 + $0x8] sm:$0xff] %vm192_vm6, %v1038_v19  ;;  %v4009_v22 = vpop.f32.mrb[13].mxu1 }
 0x5e7   :  { %v1206_v50 = vpop.f32.mrb[14].mxu1 }
 0x5e8   :  { %1211 = vrot.lane.b32.xlu0 %v1206_v50, %s4493_s23  ;;  %v4019_v25 = vpop.f32.mrb[15].mxu1 }
 0x5eb   :  { %v1378_v26 = vpop.f32.mrb[16].mxu1 }
 0x5ec   :  { %1383 = vrot.lane.b32.xlu0 %v1378_v26, %s4510_s24  ;;  %v4029_v24 = vpop.f32.mrb[17].mxu1 }
 0x5ef   :  { %v1550_v27 = vpop.f32.mrb[18].mxu1 }
 0x5f0   :  { %1555 = vrot.lane.b32.xlu1 %v1550_v27, %s4511_s25  ;;  %v4039_v28 = vpop.f32.mrb[19].mxu1  ;;  %v1651_v27 = vld [vmem:[#allocation6 + $0x26] ss:$0 sm:$0xff] }
 0x61d   :  { %v526_v29 = vpop.permute.xlu0 %525 }
 0x61e   :  { %529 = vst.msk [vmem:[#allocation2] sm:$0xff] %vm528_vm8, %v526_v29  ;;  %v1652_v29 = vld [vmem:[#allocation6 + $0x27] ss:$0 sm:$0xff] }
 0x64e   :  { %v699_v30 = vpop.permute.xlu1 %698 }
 0x64f   :  { %702 = vst.msk [vmem:[#allocation2] sm:$0xff] %vm701_vm9, %v699_v30 }
 0x652   :  { %v872_v32 = vpop.permute.xlu1 %871 }
 0x653   :  { %875 = vst.msk [vmem:[#allocation2] sm:$0xff] %vm874_vm10, %v872_v32 }
 0x65a   :  { %v1212_v33 = vpop.permute.xlu0 %1211  ;;  %v1559_v34 = vld [vmem:[#allocation2] sm:$0xff] }
 0x65b   :  { %1214 = vst.msk [vmem:[#allocation2 + $0x8] sm:$0xff] %vm528_vm8, %v1212_v33  ;;  %4048 = vmatprep.mubr.msk.f32.mxu0 %vm58_vm0, %v1559_v34 }
 0x65e   :  { %v1384_v35 = vpop.permute.xlu0 %1383 }
 0x65f   :  { %1386 = vst.msk [vmem:[#allocation2 + $0x8] sm:$0xff] %vm701_vm9, %v1384_v35 }
 0x662   :  { %v1556_v36 = vpop.permute.xlu1 %1555 }
 0x663   :  { %1558 = vst.msk [vmem:[#allocation2 + $0x8] sm:$0xff] %vm874_vm10, %v1556_v36 }
 0x66a   :  { %v1560_v37 = vld [vmem:[#allocation2 + $0x8] sm:$0xff] }
 0x66b   :  { %4049 = vmatmul.mubr.msk.f32.vlgmr.msra.gmra.mrb[14].mxu0 %vm58_vm0, %v1560_v37  ;;  %v1791_v37 = vld [vmem:[#allocation6 + $0x108] sm:$0xff] }
 0x66c   :  { %4240 = vmatpush3.bf16.msra.mxu0 %v4237_v4  ;;  %v1927_v4 = vld [vmem:[#allocation6 + $0x140] sm:$0xff] }
 0x66d   :  { %4242 = vmatprep.subr.bf16.mxu0 %v4241_v6  ;;  %v4253_v7 = vpack.c.bf16 %v1928_v5, %v1927_v4 }
 0x66f   :  { %4254 = vmatprep.subr.bf16.mxu1 %v4253_v7 }
 0x670   :  { %4244 = vmatpush3.bf16.msra.mxu0 %v4241_v6  ;;  %v1929_v6 = vld [vmem:[#allocation6 + $0x190] sm:$0xff] }
 0x671   :  { %4246 = vmatprep.subr.bf16.mxu0 %v4245_v9 }
 0x674   :  { %4248 = vmatpush3.bf16.msra.mxu0 %v4245_v9  ;;  %v4257_v9 = vpack.c.bf16 %v1930_v8, %v1929_v6 }
 0x73e   :  { %v4050_v39 = vpop.f32.mrb[14].mxu0 }
 0x73f   :  { %v1648_v40 = vadd.f32 %v4050_v39, %v4563_v1  ;;  %v1638_v41 = vpop.f32.mrb[15].mxu0 }
 0x740   :  { %v1647_v42 = vadd.f32 %v1638_v41, %v4561_v0 }
 0x741   :  { %v4766_v43 = vadd.f32 %v1648_v40, %v1565_v38  ;;  %v1701_v40 = vld [vmem:[#allocation6 + $0x22] ss:$0 sm:$0xff] }
 0x742   :  { %v4768_v44 = vadd.f32 %v1647_v42, %v1565_v38  ;;  %v1792_v38 = vld [vmem:[#allocation6 + $0x130] sm:$0xff] }
 0x743   :  { %v1656_v45 = vsel %vm58_vm0, %v4766_v43, 0.0  ;;  %v4249_v39 = vpack.c.bf16 %v1792_v38, %v1791_v37  ;;  %v1931_v37 = vld [vmem:[#allocation6 + $0x160] ss:$0 sm:$0xff] }
 0x744   :  { %1657 = vadd.xlane.f32.xlu1 %v1656_v45  ;;  %v1653_v51 = vsel %vm58_vm0, %v4768_v44, 0.0 }
 0x745   :  { %1654 = vadd.xlane.f32.xlu0 %v1653_v51  ;;  %4250 = vmatprep.subr.bf16.mxu0 %v4249_v39 }
 0x746   :  { %4252 = vmatpush3.bf16.msra.mxu0 %v4249_v39 }
 0x747   :  { %4102 = vmatprep.subr.mxu0 %v4497_v46 }
 0x7d1   :  { %v1658_v47 = vpop.xlane.xlu1 %1657 }
 0x7d2   :  { %v1660_v48 = vmul.f32 0.03125, %v1658_v47  ;;  %v1655_v49 = vpop.xlane.xlu0 %1654 }
 0x7d3   :  { %v1659_v52 = vmul.f32 0.03125, %v1655_v49  ;;  %v1793_v49 = vld [vmem:[#allocation6 + $0x23] ss:$0 sm:$0xff] }
 0x7d4   :  { %v4775_v1 = vsub.f32 %v4766_v43, %v1660_v48 }
 0x7d5   :  { %v1661_v0 = vsub.f32 %v4768_v44, %v1659_v52 }
 0x7d6   :  { %v1664_v55 = vmul.f32 %v4775_v1, %v4775_v1 }
 0x7d7   :  { %v1663_v53 = vmul.f32 %v1661_v0, %v1661_v0 }
 0x7d8   :  { %v1668_v56 = vsel %vm58_vm0, %v1664_v55, 0.0 }
 0x7d9   :  { %v1665_v54 = vsel %vm58_vm0, %v1663_v53, 0.0 }
 0x7da   :  { %1666 = vadd.xlane.f32.xlu0 %v1665_v54 }
 0x7de   :  { %1669 = vadd.xlane.f32.xlu0 %v1668_v56 }
 0x867   :  { %v1667_v11 = vpop.xlane.xlu0 %1666 }
 0x868   :  { %v1671_v12 = vmul.f32 0.032258064, %v1667_v11 }
 0x86a   :  { %4355 = vrsqrt.f32 %v1671_v12  ;;  %vm1675_vm11 = vcmp.eq.f32.partialorder %v1671_v12, inf  ;;  %v1678_v17 = vand.u32 2147483648, %v1671_v12  ;;  %vm1677_vm12 = vcmp.eq.f32.partialorder %v1671_v12, 0.0 }
 0x86b   :  { %v1670_v13 = vpop.xlane.xlu0 %1669 }
 0x86c   :  { %v1672_v14 = vmul.f32 0.032258064, %v1670_v13 }
 0x86e   :  { %4357 = vrsqrt.f32 %v1672_v14  ;;  %vm1682_vm13 = vcmp.eq.f32.partialorder %v1672_v14, inf  ;;  %v1685_v23 = vand.u32 2147483648, %v1672_v14  ;;  %vm1684_vm14 = vcmp.eq.f32.partialorder %v1672_v14, 0.0 }
 0x874   :  { %v4356_v15 = vpop.eup %4355 }
 0x875   :  { %v1674_v16 = vmul.f32 %v4356_v15, %v1671_v12 }
 0x877   :  { %v1676_v18 = vsel %vm1675_vm11, %v1671_v12, %v1674_v16 }
 0x878   :  { %v4358_v19 = vpop.eup %4357  ;;  %v1679_v20 = vsel %vm1677_vm12, %v1678_v17, %v1676_v18 }
 0x879   :  { %v1687_v21 = vadd.f32 1e-06, %v1679_v20  ;;  %v1681_v22 = vmul.f32 %v4358_v19, %v1672_v14 }
 0x87b   :  { %4359 = vrcp.f32 %v1687_v21  ;;  %v1683_v50 = vsel %vm1682_vm13, %v1672_v14, %v1681_v22 }
 0x87c   :  { %v1686_v25 = vsel %vm1684_vm14, %v1685_v23, %v1683_v50 }
 0x87d   :  { %v1688_v26 = vadd.f32 1e-06, %v1686_v25 }
 0x87f   :  { %4361 = vrcp.f32 %v1688_v26 }
 0x885   :  { %v4360_v24 = vpop.eup %4359 }
 0x886   :  { %v1691_v28 = vmul.f32 %v4360_v24, %v1661_v0 }
 0x888   :  { %v1693_v30 = vmul.f32 %v1691_v28, %v1651_v27 }
 0x889   :  { %v4362_v32 = vpop.eup %4361 }
 0x88a   :  { %v1692_v33 = vmul.f32 %v4362_v32, %v4775_v1  ;;  %v1695_v34 = vadd.f32 %v1693_v30, %v1652_v29  ;;  %v1882_v32 = vld [vmem:[#allocation6 + $0x165] ss:$0 sm:$0xff] }
 0x88c   :  { %v1694_v35 = vmul.f32 %v1692_v33, %v1651_v27  ;;  %4059 = vmatprep.mubr.msk.f32.mxu1 %vm58_vm0, %v1695_v34  ;;  %v1881_v27 = vld [vmem:[#allocation6 + $0x164] ss:$0 sm:$0xff] }
 0x88e   :  { %v1696_v36 = vadd.f32 %v1694_v35, %v1652_v29 }
 0x890   :  { %4060 = vmatmul.mubr.msk.f32.vlgmr.msra.gmra.mrb[20].mxu1 %vm58_vm0, %v1696_v36 }
 0x891   :  { %4256 = vmatpush3.bf16.msra.mxu1 %v4253_v7 }
 0x892   :  { %4258 = vmatprep.subr.bf16.mxu1 %v4257_v9 }
 0x895   :  { %4260 = vmatpush3.bf16.msra.mxu1 %v4257_v9 }
 0x896   :  { %4092 = vmatprep.subr.mxu1 %v4497_v46 }
 0x963   :  { %v4061_v41 = vpop.f32.mrb[20].mxu1 }
 0x964   :  { %v1780_v42 = vadd.f32 %v4061_v41, %v1701_v40  ;;  %v1774_v45 = vpop.f32.mrb[21].mxu1 }
 0x965   :  { %v1775_v51 = vadd.f32 %v1774_v45, %v1701_v40 }
 0x966   :  { %v1784_v48 = vmax.f32 %v1780_v42, 0.0 }
 0x967   :  { %v1783_v47 = vmax.f32 %v1775_v51, 0.0 }
 0x969   :  { %4078 = vmatprep.mubr.msk.f32.mxu0 %vm1794_vm15, %v1783_v47 }
 0x96a   :  { %4079 = vmatmul.mubr.msk.f32.vlgmr.msra.gmra.mrb[16].mxu0 %vm1794_vm15, %v1784_v48 }
 0x96b   :  { %4104 = vmatprep.mubr.msk.f32.mxu0 %vm4498_vm5, %v4497_v46 }
 0xa3d   :  { %v4080_v52 = vpop.f32.mrb[16].mxu0 }
 0xa3e   :  { %v1877_v1 = vadd.f32 %v4080_v52, %v4766_v43  ;;  %v1867_v0 = vpop.f32.mrb[17].mxu0 }
 0xa3f   :  { %v1876_v53 = vadd.f32 %v1867_v0, %v4768_v44 }
 0xa40   :  { %v4792_v54 = vadd.f32 %v1877_v1, %v1793_v49 }
 0xa41   :  { %v4794_v55 = vadd.f32 %v1876_v53, %v1793_v49 }
 0xa42   :  { %v1886_v56 = vsel %vm58_vm0, %v4792_v54, 0.0 }
 0xa43   :  { %1887 = vadd.xlane.f32.xlu1 %v1886_v56  ;;  %v1883_v57 = vsel %vm58_vm0, %v4794_v55, 0.0 }
 0xa44   :  { %1884 = vadd.xlane.f32.xlu0 %v1883_v57 }
 0xad0   :  { %v1888_v58 = vpop.xlane.xlu1 %1887 }
 0xad1   :  { %v1890_v59 = vmul.f32 0.03125, %v1888_v58  ;;  %v1885_v60 = vpop.xlane.xlu0 %1884 }
 0xad2   :  { %v1889_v61 = vmul.f32 0.03125, %v1885_v60 }
 0xad3   :  { %v1892_v43 = vsub.f32 %v4792_v54, %v1890_v59 }
 0xad4   :  { %v1891_v44 = vsub.f32 %v4794_v55, %v1889_v61 }
 0xad5   :  { %v1894_v62 = vmul.f32 %v1892_v43, %v1892_v43 }
 0xad6   :  { %v1893_v63 = vmul.f32 %v1891_v44, %v1891_v44 }
 0xad7   :  { %v1898_v2 = vsel %vm58_vm0, %v1894_v62, 0.0 }
 0xad8   :  { %1899 = vadd.xlane.f32.xlu1 %v1898_v2  ;;  %v1895_v3 = vsel %vm58_vm0, %v1893_v63, 0.0 }
 0xad9   :  { %1896 = vadd.xlane.f32.xlu0 %v1895_v3 }
 0xb65   :  { %v1900_v11 = vpop.xlane.xlu1 %1899 }
 0xb66   :  { %v1902_v12 = vmul.f32 0.032258064, %v1900_v11  ;;  %v1897_v13 = vpop.xlane.xlu0 %1896 }
 0xb67   :  { %v1901_v14 = vmul.f32 0.032258064, %v1897_v13 }
 0xb68   :  { %4363 = vrsqrt.f32 %v1902_v12  ;;  %vm1912_vm1 = vcmp.eq.f32.partialorder %v1902_v12, inf  ;;  %v1915_v18 = vand.u32 2147483648, %v1902_v12  ;;  %vm1914_vm2 = vcmp.eq.f32.partialorder %v1902_v12, 0.0 }
 0xb69   :  { %4365 = vrsqrt.f32 %v1901_v14  ;;  %vm1905_vm3 = vcmp.eq.f32.partialorder %v1901_v14, inf  ;;  %v1908_v21 = vand.u32 2147483648, %v1901_v14  ;;  %vm1907_vm4 = vcmp.eq.f32.partialorder %v1901_v14, 0.0 }
 0xb72   :  { %v4364_v15 = vpop.eup %4363 }
 0xb73   :  { %v4366_v16 = vpop.eup %4365  ;;  %v1911_v17 = vmul.f32 %v4364_v15, %v1902_v12 }
 0xb74   :  { %v1904_v19 = vmul.f32 %v4366_v16, %v1901_v14 }
 0xb75   :  { %v1913_v20 = vsel %vm1912_vm1, %v1902_v12, %v1911_v17 }
 0xb76   :  { %v1916_v22 = vsel %vm1914_vm2, %v1915_v18, %v1913_v20  ;;  %v1906_v23 = vsel %vm1905_vm3, %v1901_v14, %v1904_v19 }
 0xb77   :  { %v1918_v50 = vadd.f32 1e-06, %v1916_v22  ;;  %v1909_v25 = vsel %vm1907_vm4, %v1908_v21, %v1906_v23 }
 0xb78   :  { %v1917_v26 = vadd.f32 1e-06, %v1909_v25 }
 0xb79   :  { %4367 = vrcp.f32 %v1918_v50 }
 0xb7a   :  { %4369 = vrcp.f32 %v1917_v26 }
 0xb83   :  { %v4368_v24 = vpop.eup %4367 }
 0xb84   :  { %v4370_v28 = vpop.eup %4369  ;;  %v1922_v29 = vmul.f32 %v4368_v24, %v1892_v43 }
 0xb85   :  { %v1921_v30 = vmul.f32 %v4370_v28, %v1891_v44 }
 0xb86   :  { %v1924_v33 = vmul.f32 %v1922_v29, %v1881_v27 }
 0xb87   :  { %v1923_v34 = vmul.f32 %v1921_v30, %v1881_v27 }
 0xb88   :  { %v1926_v36 = vadd.f32 %v1924_v33, %v1882_v32 }
 0xb89   :  { %v1925_v35 = vadd.f32 %v1923_v34, %v1882_v32 }
 0xb8b   :  { %4089 = vmatprep.mubr.msk.f32.mxu1 %vm58_vm0, %v1925_v35 }
 0xb8c   :  { %4090 = vmatmul.mubr.msk.f32.vlgmr.msra.gmra.mrb[22].mxu1 %vm58_vm0, %v1926_v36 }
 0xb8d   :  { %4094 = vmatprep.mubr.msk.f32.mxu1 %vm4498_vm5, %v4497_v46 }
 0xc5f   :  { %v4091_v38 = vpop.f32.mrb[22].mxu1 }
 0xc60   :  { %v2004_v39 = vpop.f32.mrb[23].mxu1  ;;  %v4823_v41 = vadd.f32 %v4091_v38, %v1931_v37 }
 0xc61   :  { %v4809_v40 = vadd.f32 %v2004_v39, %v1931_v37 }
 0xc63   :  { %2182 = vrot.lane.b32.xlu1 %v4809_v40, %s4499_s2  ;;  %2014 = vrot.lane.b32.xlu0 %v4809_v40, %s4500_s12 }
 0xc67   :  { %2180 = vrot.lane.b32.xlu1 %v4809_v40, %s4501_s13  ;;  %2352 = vrot.lane.b32.xlu0 %v4809_v40, %s4502_s14 }
 0xc6b   :  { %2354 = vrot.lane.b32.xlu1 %v4809_v40, %s4503_s15  ;;  %2524 = vrot.lane.b32.xlu0 %v4809_v40, %s4504_s16 }
 0xc6f   :  { %2526 = vrot.lane.b32.xlu1 %v4809_v40, %s4505_s17  ;;  %2865 = vrot.lane.b32.xlu0 %v4823_v41, %s4499_s2 }
 0xc73   :  { %2697 = vrot.lane.b32.xlu1 %v4823_v41, %s4500_s12  ;;  %3037 = vrot.lane.b32.xlu0 %v4823_v41, %s4503_s15 }
 0xc77   :  { %2863 = vrot.lane.b32.xlu1 %v4823_v41, %s4501_s13  ;;  %3209 = vrot.lane.b32.xlu0 %v4823_v41, %s4505_s17 }
 0xc7b   :  { %3035 = vrot.lane.b32.xlu1 %v4823_v41, %s4502_s14 }
 0xc7f   :  { %3207 = vrot.lane.b32.xlu1 %v4823_v41, %s4504_s16 }
 0xcd5   :  { %v2183_v42 = vpop.permute.xlu1 %2182  ;;  %v2015_v45 = vpop.permute.xlu0 %2014 }
 0xcd6   :  { %4093 = vmatpush3.xpose.msk.msra.mxu1 %vm192_vm6, %v2015_v45  ;;  %4103 = vmatpush3.xpose.msk.msra.mxu0 %vm192_vm6, %v2183_v42 }
 0xcd7   :  { %4112 = vmatprep.subr.mxu0 %v4497_v46  ;;  %4097 = vmatprep.subr.mxu1 %v4497_v46 }
 0xcd9   :  { %v2181_v51 = vpop.permute.xlu1 %2180  ;;  %4095 = vmatmul.mubr.msk.f32.vlgmr.msra.gmra.mrb[24].mxu1 %vm192_vm6, %v4809_v40  ;;  %v2353_v47 = vpop.permute.xlu0 %2352 }
 0xcda   :  { %4105 = vmatmul.mubr.msk.f32.vlgmr.msra.gmra.mrb[18].mxu0 %vm192_vm6, %v2181_v51  ;;  %4099 = vmatprep.mubr.msk.f32.mxu1 %vm4498_vm5, %v4497_v46 }
 0xcdb   :  { %4114 = vmatprep.mubr.msk.f32.mxu0 %vm4498_vm5, %v4497_v46 }
 0xcdd   :  { %v2355_v48 = vpop.permute.xlu1 %2354  ;;  %v2525_v49 = vpop.permute.xlu0 %2524 }
 0xcde   :  { %4113 = vmatpush3.xpose.msk.msra.mxu0 %vm192_vm6, %v2355_v48 }
 0xcdf   :  { %4122 = vmatprep.subr.mxu0 %v4497_v46 }
 0xce1   :  { %v2527_v52 = vpop.permute.xlu1 %2526  ;;  %4115 = vmatmul.mubr.msk.f32.vlgmr.msra.gmra.mrb[20].mxu0 %vm192_vm6, %v2353_v47  ;;  %v2866_v1 = vpop.permute.xlu0 %2865 }
 0xce2   :  { %4123 = vmatpush3.xpose.msk.msra.mxu0 %vm192_vm6, %v2527_v52  ;;  %4124 = vmatprep.mubr.msk.f32.mxu0 %vm4498_vm5, %v4497_v46 }
 0xce3   :  { %4132 = vmatprep.subr.mxu0 %v4497_v46 }
 0xce5   :  { %v2698_v0 = vpop.permute.xlu1 %2697  ;;  %4125 = vmatmul.mubr.msk.f32.vlgmr.msra.gmra.mrb[22].mxu0 %vm192_vm6, %v2525_v49  ;;  %v3038_v56 = vpop.permute.xlu0 %3037 }
 0xce6   :  { %4133 = vmatpush3.xpose.msk.msra.mxu0 %vm192_vm6, %v2698_v0  ;;  %4134 = vmatprep.mubr.msk.f32.mxu0 %vm4498_vm5, %v4497_v46 }
 0xce7   :  { %4142 = vmatprep.subr.mxu0 %v4497_v46 }
 0xce9   :  { %v2864_v53 = vpop.permute.xlu1 %2863  ;;  %4135 = vmatmul.mubr.msk.f32.vlgmr.msra.gmra.mrb[24].mxu0 %vm192_vm6, %v4823_v41  ;;  %v3210_v58 = vpop.permute.xlu0 %3209 }
 0xcea   :  { %4143 = vmatpush3.xpose.msk.msra.mxu0 %vm192_vm6, %v2866_v1  ;;  %4144 = vmatprep.mubr.msk.f32.mxu0 %vm4498_vm5, %v4497_v46 }
 0xceb   :  { %4152 = vmatprep.subr.mxu0 %v4497_v46 }
 0xced   :  { %4145 = vmatmul.mubr.msk.f32.vlgmr.msra.gmra.mrb[26].mxu0 %vm192_vm6, %v2864_v53  ;;  %v3036_v57 = vpop.permute.xlu1 %3035 }
 0xcee   :  { %4153 = vmatpush3.xpose.msk.msra.mxu0 %vm192_vm6, %v3038_v56  ;;  %4154 = vmatprep.mubr.msk.f32.mxu0 %vm4498_vm5, %v4497_v46 }
 0xcef   :  { %4162 = vmatprep.subr.mxu0 %v4497_v46 }
 0xcf1   :  { %4155 = vmatmul.mubr.msk.f32.vlgmr.msra.gmra.mrb[28].mxu0 %vm192_vm6, %v3036_v57  ;;  %v3208_v59 = vpop.permute.xlu1 %3207 }
 0xcf2   :  { %4163 = vmatpush3.xpose.msk.msra.mxu0 %vm192_vm6, %v3210_v58  ;;  %4164 = vmatprep.mubr.msk.f32.mxu0 %vm4498_vm5, %v4497_v46 }
 0xcf5   :  { %4165 = vmatmul.mubr.msk.f32.vlgmr.msra.gmra.mrb[30].mxu0 %vm192_vm6, %v3208_v59 }
 0xdac   :  { %v2086_v60 = vpop.f32.mrb[24].mxu1 }
 0xdad   :  { %v2090_v61 = vmul.f32 0.35355338, %v2086_v60  ;;  %v4096_v43 = vpop.f32.mrb[25].mxu1  ;;  %v2254_v44 = vpop.f32.mrb[18].mxu0 }
 0xdae   :  { %v2258_v62 = vmul.f32 0.35355338, %v2254_v44  ;;  %v4106_v63 = vpop.f32.mrb[19].mxu0 }
 0xdaf   :  { %v2091_v2 = vadd.f32 %v2090_v61, %v4655_v10 }
 0xdb0   :  { %v2259_v3 = vadd.f32 %v2258_v62, %v4655_v10 }
 0xdb1   :  { %v2092_v4 = vsel %vm192_vm6, %v2091_v2, -inf }
 0xdb2   :  { %2093 = vmax.xlane.f32.xlu0 %v2092_v4  ;;  %v2260_v5 = vsel %vm192_vm6, %v2259_v3, -inf }
 0xdb3   :  { %2261 = vmax.xlane.f32.xlu1 %v2260_v5 }
 0xdb4   :  { %v2426_v6 = vpop.f32.mrb[20].mxu0 }
 0xdb5   :  { %v2430_v7 = vmul.f32 0.35355338, %v2426_v6  ;;  %v4116_v8 = vpop.f32.mrb[21].mxu0 }
 0xdb7   :  { %v4885_v9 = vadd.f32 %v2430_v7, %v4655_v10 }
 0xdb8   :  { %v2598_v11 = vpop.f32.mrb[22].mxu0 }
 0xdb9   :  { %v2602_v12 = vmul.f32 0.35355338, %v2598_v11  ;;  %v4126_v13 = vpop.f32.mrb[23].mxu0  ;;  %v2432_v14 = vsel %vm192_vm6, %v4885_v9, -inf }
 0xdba   :  { %2433 = vmax.xlane.f32.xlu0 %v2432_v14 }
 0xdbb   :  { %v2603_v15 = vadd.f32 %v2602_v12, %v4655_v10 }
 0xdbc   :  { %v2769_v16 = vpop.f32.mrb[24].mxu0 }
 0xdbd   :  { %v2773_v17 = vmul.f32 0.35355338, %v2769_v16  ;;  %v4136_v18 = vpop.f32.mrb[25].mxu0  ;;  %v2604_v19 = vsel %vm192_vm6, %v2603_v15, -inf }
 0xdbe   :  { %2605 = vmax.xlane.f32.xlu0 %v2604_v19 }
 0xdbf   :  { %v2774_v20 = vadd.f32 %v2773_v17, %v4667_v31 }
 0xdc0   :  { %v2937_v21 = vpop.f32.mrb[26].mxu0 }
 0xdc1   :  { %v2941_v22 = vmul.f32 0.35355338, %v2937_v21  ;;  %v4146_v23 = vpop.f32.mrb[27].mxu0  ;;  %v2775_v50 = vsel %vm192_vm6, %v2774_v20, -inf }
 0xdc2   :  { %2776 = vmax.xlane.f32.xlu0 %v2775_v50 }
 0xdc3   :  { %v2942_v25 = vadd.f32 %v2941_v22, %v4667_v31 }
 0xdc4   :  { %v3109_v26 = vpop.f32.mrb[28].mxu0 }
 0xdc5   :  { %v3113_v24 = vmul.f32 0.35355338, %v3109_v26  ;;  %v4156_v27 = vpop.f32.mrb[29].mxu0  ;;  %v2943_v10 = vsel %vm192_vm6, %v2942_v25, -inf }
 0xdc6   :  { %2944 = vmax.xlane.f32.xlu1 %v2943_v10 }
 0xdc7   :  { %v3114_v28 = vadd.f32 %v3113_v24, %v4667_v31 }
 0xdc8   :  { %v3281_v29 = vpop.f32.mrb[30].mxu0 }
 0xdc9   :  { %v4166_v30 = vpop.f32.mrb[31].mxu0  ;;  %v3115_v32 = vsel %vm192_vm6, %v3114_v28, -inf  ;;  %v3285_v33 = vmul.f32 0.35355338, %v3281_v29 }
 0xdca   :  { %3116 = vmax.xlane.f32.xlu0 %v3115_v32 }
 0xdcb   :  { %v3286_v34 = vadd.f32 %v3285_v33, %v4667_v31 }
 0xdcd   :  { %v3287_v35 = vsel %vm192_vm6, %v3286_v34, -inf }
 0xdd7   :  { %2103 = vrot.lane.b32.xlu1 %v4809_v40, %s4507_s1 }
 0xdfb   :  { %3288 = vmax.xlane.f32.xlu1 %v3287_v35 }
 0xe0c   :  { %2443 = vrot.lane.b32.xlu1 %v4809_v40, %s4508_s20 }
 0xe10   :  { %2615 = vrot.lane.b32.xlu1 %v4809_v40, %s4496_s9 }
 0xe14   :  { %2786 = vrot.lane.b32.xlu1 %v4823_v41, %s4507_s1 }
 0xe3f   :  { %v2094_v36 = vpop.xlane.xlu0 %2093 }
 0xe40   :  { %v2095_v37 = vsub.f32 %v2091_v2, %v2094_v36  ;;  %v2262_v38 = vpop.xlane.xlu1 %2261 }
 0xe41   :  { %v2263_v39 = vsub.f32 %v2259_v3, %v2262_v38 }
 0xe42   :  { %v2096_v42 = vmul.f32 1.442695, %v2095_v37 }
 0xe43   :  { %v2264_v45 = vmul.f32 1.442695, %v2263_v39 }
 0xe44   :  { %4371 = vpow2.f32 %v2096_v42 }
 0xe45   :  { %4373 = vpow2.f32 %v2264_v45 }
 0xe47   :  { %v2434_v31 = vpop.xlane.xlu0 %2433 }
 0xe48   :  { %v2435_v59 = vsub.f32 %v4885_v9, %v2434_v31 }
 0xe4a   :  { %v2436_v61 = vmul.f32 1.442695, %v2435_v59  ;;  %v3381_v59 = vld [vmem:[#allocation6 + $0x148] sm:$0xff] }
 0xe4b   :  { %v2606_v51 = vpop.xlane.xlu0 %2605 }
 0xe4c   :  { %v2607_v47 = vsub.f32 %v2603_v15, %v2606_v51 }
 0xe4e   :  { %v4372_v48 = vpop.eup %4371  ;;  %v2608_v49 = vmul.f32 1.442695, %v2607_v47 }
 0xe4f   :  { %v4907_v52 = vpop.eup %4373  ;;  %v2098_v1 = vsel %vm192_vm6, %v4372_v48, 0.0  ;;  %v2777_v60 = vpop.xlane.xlu0 %2776 }
 0xe50   :  { %4375 = vpow2.f32 %v2608_v49  ;;  %2099 = vadd.xlane.f32.xlu0 %v2098_v1  ;;  %v2266_v0 = vsel %vm192_vm6, %v4907_v52, 0.0  ;;  %v2778_v43 = vsub.f32 %v2774_v20, %v2777_v60  ;;  %v3382_v60 = vld [vmem:[#allocation6 + $0x170] sm:$0xff] }
 0xe51   :  { %2267 = vadd.xlane.f32.xlu1 %v2266_v0  ;;  %4377 = vpow2.f32 %v2436_v61  ;;  %v4261_v61 = vpack.c.bf16 %v3382_v60, %v3381_v59 }
 0xe52   :  { %v2779_v62 = vmul.f32 1.442695, %v2778_v43 }
 0xe53   :  { %v2945_v53 = vpop.xlane.xlu1 %2944  ;;  %4262 = vmatprep.subr.bf16.mxu0 %v4261_v61 }
 0xe54   :  { %4379 = vpow2.f32 %v2779_v62  ;;  %v2946_v2 = vsub.f32 %v2942_v25, %v2945_v53  ;;  %v3384_v62 = vld [vmem:[#allocation6 + $0x1c0] sm:$0xff]  ;;  %4264 = vmatpush3.bf16.msra.mxu0 %v4261_v61 }
 0xe56   :  { %v2947_v4 = vmul.f32 1.442695, %v2946_v2 }
 0xe57   :  { %v2104_v56 = vpop.permute.xlu1 %2103  ;;  %v3117_v44 = vpop.xlane.xlu0 %3116 }
 0xe58   :  { %4098 = vmatpush3.msra.mxu1 %v2104_v56  ;;  %v3118_v63 = vsub.f32 %v3114_v28, %v3117_v44  ;;  %v3383_v44 = vld [vmem:[#allocation6 + $0x198] sm:$0xff] }
 0xe59   :  { %4107 = vmatprep.subr.mxu1 %v4497_v46  ;;  %v4265_v2 = vpack.c.bf16 %v3384_v62, %v3383_v44 }
 0xe5a   :  { %v4913_v57 = vpop.eup %4375  ;;  %v3119_v3 = vmul.f32 1.442695, %v3118_v63 }
 0xe5b   :  { %v2610_v58 = vsel %vm192_vm6, %v4913_v57, 0.0  ;;  %v4378_v5 = vpop.eup %4377  ;;  %4266 = vmatprep.subr.bf16.mxu0 %v4265_v2 }
 0xe5c   :  { %2611 = vadd.xlane.f32.xlu1 %v2610_v58  ;;  %4381 = vpow2.f32 %v3119_v3  ;;  %4268 = vmatpush3.bf16.msra.mxu0 %v4265_v2 }
 0xe5d   :  { %4383 = vpow2.f32 %v2947_v4 }
 0xe5e   :  { %v4380_v6 = vpop.eup %4379 }
 0xe5f   :  { %v2781_v8 = vsel %vm192_vm6, %v4380_v6, 0.0 }
 0xe66   :  { %2271 = vrot.lane.b32.xlu0 %v4809_v40, %s4509_s21  ;;  %v2438_v40 = vsel %vm192_vm6, %v4378_v5, 0.0  ;;  %v4924_v9 = vpop.eup %4381 }
 0xe67   :  { %v3121_v13 = vsel %vm192_vm6, %v4924_v9, 0.0  ;;  %v4384_v14 = vpop.eup %4383 }
 0xe68   :  { %v2949_v15 = vsel %vm192_vm6, %v4384_v14, 0.0 }
 0xe6d   :  { %2954 = vrot.lane.b32.xlu1 %v4823_v41, %s4509_s21 }
 0xe85   :  { %2439 = vadd.xlane.f32.xlu0 %v2438_v40 }
 0xe88   :  { %v3289_v7 = vpop.xlane.xlu1 %3288 }
 0xe89   :  { %v3290_v11 = vsub.f32 %v3286_v34, %v3289_v7  ;;  %2782 = vadd.xlane.f32.xlu0 %v2781_v8 }
 0xe8b   :  { %v3291_v12 = vmul.f32 1.442695, %v3290_v11 }
 0xe8c   :  { %v2444_v18 = vpop.permute.xlu1 %2443 }
 0xe8d   :  { %4385 = vpow2.f32 %v3291_v12  ;;  %3122 = vadd.xlane.f32.xlu0 %v3121_v13 }
 0xe90   :  { %v2616_v19 = vpop.permute.xlu1 %2615 }
 0xe91   :  { %2950 = vadd.xlane.f32.xlu1 %v2949_v15 }
 0xe94   :  { %v2787_v20 = vpop.permute.xlu1 %2786 }
 0xe97   :  { %v4929_v16 = vpop.eup %4385 }
 0xe98   :  { %v3293_v17 = vsel %vm192_vm6, %v4929_v16, 0.0 }
 0xe99   :  { %3294 = vadd.xlane.f32.xlu0 %v3293_v17  ;;  %v3385_v17 = vld [vmem:[#allocation6 + $0x161] ss:$0 sm:$0xff] }
 0xea2   :  { %3298 = vrot.lane.b32.xlu1 %v4823_v41, %s4496_s9 }
 0xeaf   :  { %3126 = vrot.lane.b32.xlu0 %v4823_v41, %s4508_s20 }
 0xedd   :  { %v2100_v21 = vpop.xlane.xlu0 %2099 }
 0xede   :  { %4387 = vrcp.f32 %v2100_v21  ;;  %v2268_v22 = vpop.xlane.xlu1 %2267 }
 0xedf   :  { %4389 = vrcp.f32 %v2268_v22 }
 0xee1   :  { %v2272_v26 = vpop.permute.xlu0 %2271 }
 0xee8   :  { %v4388_v23 = vpop.eup %4387 }
 0xee9   :  { %v2102_v50 = vmul.f32 %v4388_v23, %v4372_v48  ;;  %v4390_v25 = vpop.eup %4389  ;;  %v2612_v41 = vpop.xlane.xlu1 %2611 }
 0xeea   :  { %v2270_v24 = vmul.f32 %v4390_v25, %v4907_v52 }
 0xeeb   :  { %4100 = vmatmul.mubr.msk.f32.vlgmr.msra.gmra.mrb[26].mxu1 %vm192_vm6, %v2102_v50 }
 0xeec   :  { %4108 = vmatpush3.msra.mxu1 %v2272_v26  ;;  %4109 = vmatprep.mubr.msk.f32.mxu1 %vm4498_vm5, %v4497_v46 }
 0xeed   :  { %4117 = vmatprep.subr.mxu1 %v4497_v46  ;;  %v2955_v28 = vpop.permute.xlu1 %2954 }
 0xeef   :  { %4110 = vmatmul.mubr.msk.f32.vlgmr.msra.gmra.mrb[28].mxu1 %vm192_vm6, %v2270_v24 }
 0xef0   :  { %4118 = vmatpush3.msra.mxu1 %v2444_v18  ;;  %4119 = vmatprep.mubr.msk.f32.mxu1 %vm4498_vm5, %v4497_v46 }
 0xef1   :  { %4127 = vmatprep.subr.mxu1 %v4497_v46 }
 0xf12   :  { %v2440_v27 = vpop.xlane.xlu0 %2439 }
 0xf13   :  { %4391 = vrcp.f32 %v2440_v27 }
 0xf14   :  { %4393 = vrcp.f32 %v2612_v41 }
 0xf16   :  { %v2783_v10 = vpop.xlane.xlu0 %2782 }
 0xf17   :  { %4395 = vrcp.f32 %v2783_v10 }
 0xf1a   :  { %v3123_v32 = vpop.xlane.xlu0 %3122 }
 0xf1d   :  { %v4392_v29 = vpop.eup %4391 }
 0xf1e   :  { %v2442_v30 = vmul.f32 %v4392_v29, %v4378_v5  ;;  %v2951_v33 = vpop.xlane.xlu1 %2950  ;;  %v4394_v34 = vpop.eup %4393 }
 0xf1f   :  { %4397 = vrcp.f32 %v2951_v33  ;;  %v2614_v35 = vmul.f32 %v4394_v34, %v4913_v57  ;;  %v3518_v33 = vld [vmem:[#allocation6 + $0x178] sm:$0xff]  ;;  %v3519_v34 = vld [vmem:[#allocation6 + $0x1a0] sm:$0xff] }
 0xf20   :  { %4120 = vmatmul.mubr.msk.f32.vlgmr.msra.gmra.mrb[30].mxu1 %vm192_vm6, %v2442_v30  ;;  %4399 = vrcp.f32 %v3123_v32  ;;  %v3517_v32 = vld [vmem:[#allocation6 + $0x150] sm:$0xff] }
 0xf21   :  { %4128 = vmatpush3.msra.mxu1 %v2616_v19  ;;  %4129 = vmatprep.mubr.msk.f32.mxu1 %vm4498_vm5, %v4497_v46  ;;  %v4396_v36 = vpop.eup %4395 }
 0xf22   :  { %4137 = vmatprep.subr.mxu1 %v4497_v46  ;;  %v2785_v37 = vmul.f32 %v4396_v36, %v4380_v6  ;;  %v3299_v47 = vpop.permute.xlu1 %3298  ;;  %v3520_v36 = vld [vmem:[#allocation6 + $0x1c8] sm:$0xff] }
 0xf24   :  { %4130 = vmatmul.mubr.msk.f32.vlgmr.msra.gmra.mrb[32].mxu1 %vm192_vm6, %v2614_v35  ;;  %v4269_v35 = vpack.c.bf16 %v3518_v33, %v3517_v32 }
 0xf25   :  { %4138 = vmatpush3.msra.mxu1 %v2787_v20  ;;  %4139 = vmatprep.mubr.msk.f32.mxu1 %vm4498_vm5, %v4497_v46 }
 0xf26   :  { %v3295_v38 = vpop.xlane.xlu0 %3294  ;;  %4147 = vmatprep.subr.mxu1 %v4497_v46 }
 0xf27   :  { %4401 = vrcp.f32 %v3295_v38  ;;  %v3605_v38 = vld [vmem:[#allocation6 + $0x158] sm:$0xff] }
 0xf28   :  { %4140 = vmatmul.mubr.msk.f32.vlgmr.msra.gmra.mrb[34].mxu1 %vm192_vm6, %v2785_v37  ;;  %v4273_v37 = vpack.c.bf16 %v3520_v36, %v3519_v34 }
 0xf29   :  { %v4398_v39 = vpop.eup %4397  ;;  %4148 = vmatpush3.msra.mxu1 %v2955_v28  ;;  %4149 = vmatprep.mubr.msk.f32.mxu1 %vm4498_vm5, %v4497_v46 }
 0xf2a   :  { %v2953_v42 = vmul.f32 %v4398_v39, %v4384_v14  ;;  %v3127_v45 = vpop.permute.xlu0 %3126  ;;  %4157 = vmatprep.subr.mxu1 %v4497_v46  ;;  %v4400_v31 = vpop.eup %4399  ;;  %v3606_v39 = vld [vmem:[#allocation6 + $0x180] sm:$0xff] }
 0xf2b   :  { %v3125_v51 = vmul.f32 %v4400_v31, %v4924_v9  ;;  %v3608_v31 = vld [vmem:[#allocation6 + $0x1d0] sm:$0xff] }
 0xf2c   :  { %4150 = vmatmul.mubr.msk.f32.vlgmr.msra.gmra.mrb[36].mxu1 %vm192_vm6, %v2953_v42  ;;  %v3607_v42 = vld [vmem:[#allocation6 + $0x1a8] sm:$0xff] }
 0xf2d   :  { %4158 = vmatpush3.msra.mxu1 %v3127_v45  ;;  %4159 = vmatprep.mubr.msk.f32.mxu1 %vm4498_vm5, %v4497_v46  ;;  %v4277_v45 = vpack.c.bf16 %v3606_v39, %v3605_v38 }
 0xf2e   :  { %4167 = vmatprep.subr.mxu1 %v4497_v46 }
 0xf2f   :  { %4278 = vmatprep.subr.bf16.mxu0 %v4277_v45 }
 0xf30   :  { %4160 = vmatmul.mubr.msk.f32.vlgmr.msra.gmra.mrb[38].mxu1 %vm192_vm6, %v3125_v51  ;;  %v4281_v51 = vpack.c.bf16 %v3608_v31, %v3607_v42 }
 0xf31   :  { %v4402_v48 = vpop.eup %4401  ;;  %4168 = vmatpush3.msra.mxu1 %v3299_v47  ;;  %4169 = vmatprep.mubr.msk.f32.mxu1 %vm4498_vm5, %v4497_v46  ;;  %v3609_v47 = vld [vmem:[#allocation6 + $0x1f8] sm:$0xff] }
 0xf32   :  { %v3297_v49 = vmul.f32 %v4402_v48, %v4929_v16  ;;  %4270 = vmatprep.subr.bf16.mxu1 %v4269_v35  ;;  %v3610_v48 = vld [vmem:[#allocation6 + $0x220] sm:$0xff] }
 0xf34   :  { %4170 = vmatmul.mubr.msk.f32.vlgmr.msra.gmra.mrb[40].mxu1 %vm192_vm6, %v3297_v49  ;;  %v4285_v49 = vpack.c.bf16 %v3610_v48, %v3609_v47 }
 0xf35   :  { %4272 = vmatpush3.bf16.msra.mxu1 %v4269_v35 }
 0xf36   :  { %4274 = vmatprep.subr.bf16.mxu1 %v4273_v37 }
 0xf39   :  { %4276 = vmatpush3.bf16.msra.mxu1 %v4273_v37 }
 0xfbe   :  { %v2175_v52 = vpop.f32.mrb[26].mxu1 }
 0xfbf   :  { %2179 = vst.msk [vmem:[#allocation2] sm:$0xff] %vm192_vm6, %v2175_v52  ;;  %v4101_v1 = vpop.f32.mrb[27].mxu1 }
 0xfc2   :  { %v2343_v0 = vpop.f32.mrb[28].mxu1 }
 0xfc3   :  { %2348 = vrot.lane.b32.xlu0 %v2343_v0, %s4493_s23  ;;  %v4111_v53 = vpop.f32.mrb[29].mxu1 }
 0xff3   :  { %v2515_v56 = vpop.f32.mrb[30].mxu1 }
 0xff4   :  { %2520 = vrot.lane.b32.xlu1 %v2515_v56, %s4510_s24  ;;  %v4121_v57 = vpop.f32.mrb[31].mxu1 }
 0xff7   :  { %v2687_v58 = vpop.f32.mrb[32].mxu1 }
 0xff8   :  { %2692 = vrot.lane.b32.xlu1 %v2687_v58, %s4511_s25  ;;  %v4131_v46 = vpop.f32.mrb[33].mxu1 }
 0xffb   :  { %v2858_v43 = vpop.f32.mrb[34].mxu1 }
 0xffc   :  { %2862 = vst.msk [vmem:[#allocation2 + $0x8] sm:$0xff] %vm192_vm6, %v2858_v43  ;;  %v4141_v63 = vpop.f32.mrb[35].mxu1 }
 0xfff   :  { %v3026_v3 = vpop.f32.mrb[36].mxu1 }
0x1000   :  { %3031 = vrot.lane.b32.xlu0 %v3026_v3, %s4493_s23  ;;  %v4151_v4 = vpop.f32.mrb[37].mxu1 }
0x1001   :  { %v3471_v4 = vld [vmem:[#allocation6 + $0x166] ss:$0 sm:$0xff] }
0x1003   :  { %v3198_v5 = vpop.f32.mrb[38].mxu1 }
0x1004   :  { %3203 = vrot.lane.b32.xlu0 %v3198_v5, %s4510_s24  ;;  %v4161_v40 = vpop.f32.mrb[39].mxu1 }
0x1005   :  { %v3472_v40 = vld [vmem:[#allocation6 + $0x167] ss:$0 sm:$0xff] }
0x1007   :  { %v3370_v6 = vpop.f32.mrb[40].mxu1 }
0x1008   :  { %3375 = vrot.lane.b32.xlu1 %v3370_v6, %s4511_s25  ;;  %v4171_v7 = vpop.f32.mrb[41].mxu1 }
0x1035   :  { %v2349_v8 = vpop.permute.xlu0 %2348 }
0x1036   :  { %2351 = vst.msk [vmem:[#allocation2] sm:$0xff] %vm528_vm8, %v2349_v8 }
0x1066   :  { %v2521_v9 = vpop.permute.xlu1 %2520 }
0x1067   :  { %2523 = vst.msk [vmem:[#allocation2] sm:$0xff] %vm701_vm9, %v2521_v9 }
0x106a   :  { %v2693_v11 = vpop.permute.xlu1 %2692 }
0x106b   :  { %2695 = vst.msk [vmem:[#allocation2] sm:$0xff] %vm874_vm10, %v2693_v11 }
0x1072   :  { %v3032_v12 = vpop.permute.xlu0 %3031  ;;  %v3379_v13 = vld [vmem:[#allocation2] sm:$0xff] }
0x1073   :  { %3034 = vst.msk [vmem:[#allocation2 + $0x8] sm:$0xff] %vm528_vm8, %v3032_v12  ;;  %4180 = vmatprep.mubr.msk.f32.mxu0 %vm58_vm0, %v3379_v13  ;;  %v3611_v13 = vld [vmem:[#allocation6 + $0x248] sm:$0xff] }
0x1076   :  { %v3204_v14 = vpop.permute.xlu0 %3203 }
0x1077   :  { %3206 = vst.msk [vmem:[#allocation2 + $0x8] sm:$0xff] %vm701_vm9, %v3204_v14  ;;  %v3612_v14 = vld [vmem:[#allocation6 + $0x270] sm:$0xff] }
0x107a   :  { %v3376_v15 = vpop.permute.xlu1 %3375 }
0x107b   :  { %3378 = vst.msk [vmem:[#allocation2 + $0x8] sm:$0xff] %vm874_vm10, %v3376_v15  ;;  %v4289_v15 = vpack.c.bf16 %v3612_v14, %v3611_v13 }
0x1082   :  { %v3380_v16 = vld [vmem:[#allocation2 + $0x8] sm:$0xff] }
0x1083   :  { %4181 = vmatmul.mubr.msk.f32.vlgmr.msra.gmra.mrb[32].mxu0 %vm58_vm0, %v3380_v16  ;;  %v3521_v16 = vld [vmem:[#allocation6 + $0x162] ss:$0 sm:$0xff] }
0x1084   :  { %4280 = vmatpush3.bf16.msra.mxu0 %v4277_v45 }
0x1085   :  { %4282 = vmatprep.subr.bf16.mxu0 %v4281_v51 }
0x1088   :  { %4284 = vmatpush3.bf16.msra.mxu0 %v4281_v51 }
0x1089   :  { %4286 = vmatprep.subr.bf16.mxu0 %v4285_v49 }
0x108c   :  { %4288 = vmatpush3.bf16.msra.mxu0 %v4285_v49 }
0x108d   :  { %4290 = vmatprep.subr.bf16.mxu0 %v4289_v15 }
0x1090   :  { %4292 = vmatpush3.bf16.msra.mxu0 %v4289_v15 }
0x1156   :  { %v4182_v18 = vpop.f32.mrb[32].mxu0 }
0x1157   :  { %v3468_v19 = vadd.f32 %v4182_v18, %v4792_v54  ;;  %v3458_v20 = vpop.f32.mrb[33].mxu0 }
0x1158   :  { %v3467_v21 = vadd.f32 %v3458_v20, %v4794_v55 }
0x1159   :  { %v4987_v22 = vadd.f32 %v3468_v19, %v3385_v17 }
0x115a   :  { %v4989_v23 = vadd.f32 %v3467_v21, %v3385_v17 }
0x115b   :  { %v3476_v50 = vsel %vm58_vm0, %v4987_v22, 0.0 }
0x115c   :  { %3477 = vadd.xlane.f32.xlu1 %v3476_v50  ;;  %v3473_v25 = vsel %vm58_vm0, %v4989_v23, 0.0 }
0x115d   :  { %3474 = vadd.xlane.f32.xlu0 %v3473_v25  ;;  %v3613_v25 = vld [vmem:[#allocation6 + $0x163] ss:$0 sm:$0xff] }
0x11e9   :  { %v3478_v26 = vpop.xlane.xlu1 %3477 }
0x11ea   :  { %v3480_v24 = vmul.f32 0.03125, %v3478_v26  ;;  %v3475_v41 = vpop.xlane.xlu0 %3474 }
0x11eb   :  { %v3479_v27 = vmul.f32 0.03125, %v3475_v41 }
0x11ec   :  { %v4996_v54 = vsub.f32 %v4987_v22, %v3480_v24 }
0x11ed   :  { %v3481_v55 = vsub.f32 %v4989_v23, %v3479_v27 }
0x11ee   :  { %v3484_v29 = vmul.f32 %v4996_v54, %v4996_v54 }
0x11ef   :  { %v3483_v10 = vmul.f32 %v3481_v55, %v3481_v55 }
0x11f0   :  { %v3488_v30 = vsel %vm58_vm0, %v3484_v29, 0.0 }
0x11f1   :  { %v3485_v28 = vsel %vm58_vm0, %v3483_v10, 0.0 }
0x11f2   :  { %3486 = vadd.xlane.f32.xlu0 %v3485_v28 }
0x11f6   :  { %3489 = vadd.xlane.f32.xlu0 %v3488_v30 }
0x127f   :  { %v3487_v52 = vpop.xlane.xlu0 %3486 }
0x1280   :  { %v3491_v1 = vmul.f32 0.032258064, %v3487_v52 }
0x1282   :  { %4403 = vrsqrt.f32 %v3491_v1  ;;  %vm3495_vm5 = vcmp.eq.f32.partialorder %v3491_v1, inf  ;;  %v3498_v58 = vand.u32 2147483648, %v3491_v1  ;;  %vm3497_vm6 = vcmp.eq.f32.partialorder %v3491_v1, 0.0 }
0x1283   :  { %v3490_v0 = vpop.xlane.xlu0 %3489 }
0x1284   :  { %v3492_v53 = vmul.f32 0.032258064, %v3490_v0 }
0x1286   :  { %4405 = vrsqrt.f32 %v3492_v53  ;;  %vm3502_vm7 = vcmp.eq.f32.partialorder %v3492_v53, inf  ;;  %v3505_v44 = vand.u32 2147483648, %v3492_v53  ;;  %vm3504_vm8 = vcmp.eq.f32.partialorder %v3492_v53, 0.0 }
0x128c   :  { %v4404_v56 = vpop.eup %4403 }
0x128d   :  { %v3494_v57 = vmul.f32 %v4404_v56, %v3491_v1 }
0x128f   :  { %v3496_v46 = vsel %vm3495_vm5, %v3491_v1, %v3494_v57 }
0x1290   :  { %v4406_v59 = vpop.eup %4405  ;;  %v3499_v60 = vsel %vm3497_vm6, %v3498_v58, %v3496_v46 }
0x1291   :  { %v3507_v61 = vadd.f32 1e-06, %v3499_v60  ;;  %v3501_v43 = vmul.f32 %v4406_v59, %v3492_v53  ;;  %v3699_v59 = vld [vmem:[#allocation6 + $0x48] ss:$0 sm:$0xff] }
0x1293   :  { %4407 = vrcp.f32 %v3507_v61  ;;  %v3503_v62 = vsel %vm3502_vm7, %v3492_v53, %v3501_v43  ;;  %v3700_v43 = vld [vmem:[#allocation6 + $0x49] ss:$0 sm:$0xff] }
0x1294   :  { %v3506_v63 = vsel %vm3504_vm8, %v3505_v44, %v3503_v62 }
0x1295   :  { %v3508_v2 = vadd.f32 1e-06, %v3506_v63 }
0x1297   :  { %4409 = vrcp.f32 %v3508_v2 }
0x129d   :  { %v4408_v3 = vpop.eup %4407 }
0x129e   :  { %v3511_v5 = vmul.f32 %v4408_v3, %v3481_v55 }
0x12a0   :  { %v3513_v6 = vmul.f32 %v3511_v5, %v3471_v4 }
0x12a1   :  { %v4410_v7 = vpop.eup %4409 }
0x12a2   :  { %v3512_v8 = vmul.f32 %v4410_v7, %v4996_v54  ;;  %v3515_v9 = vadd.f32 %v3513_v6, %v3472_v40 }
0x12a4   :  { %v3514_v11 = vmul.f32 %v3512_v8, %v3471_v4  ;;  %4191 = vmatprep.mubr.msk.f32.mxu1 %vm58_vm0, %v3515_v9 }
0x12a6   :  { %v3516_v12 = vadd.f32 %v3514_v11, %v3472_v40 }
0x12a8   :  { %4192 = vmatmul.mubr.msk.f32.vlgmr.msra.gmra.mrb[42].mxu1 %vm58_vm0, %v3516_v12 }
0x137b   :  { %v4193_v17 = vpop.f32.mrb[42].mxu1 }
0x137c   :  { %v3600_v18 = vadd.f32 %v4193_v17, %v3521_v16  ;;  %v3594_v19 = vpop.f32.mrb[43].mxu1 }
0x137d   :  { %v3595_v20 = vadd.f32 %v3594_v19, %v3521_v16 }
0x137e   :  { %v3604_v50 = vmax.f32 %v3600_v18, 0.0 }
0x137f   :  { %v3603_v21 = vmax.f32 %v3595_v20, 0.0 }
0x1381   :  { %4210 = vmatprep.mubr.msk.f32.mxu0 %vm1794_vm15, %v3603_v21 }
0x1382   :  { %4211 = vmatmul.mubr.msk.f32.vlgmr.msra.gmra.mrb[34].mxu0 %vm1794_vm15, %v3604_v50 }
0x1455   :  { %v4212_v26 = vpop.f32.mrb[34].mxu0 }
0x1456   :  { %v3696_v24 = vadd.f32 %v4212_v26, %v4987_v22  ;;  %v3686_v41 = vpop.f32.mrb[35].mxu0 }
0x1457   :  { %v3695_v27 = vadd.f32 %v3686_v41, %v4989_v23 }
0x1458   :  { %v3698_v54 = vadd.f32 %v3696_v24, %v3613_v25 }
0x1459   :  { %v3697_v55 = vadd.f32 %v3695_v27, %v3613_v25 }
0x145a   :  { %v3704_v10 = vsel %vm58_vm0, %v3698_v54, 0.0 }
0x145b   :  { %3705 = vadd.xlane.f32.xlu1 %v3704_v10  ;;  %v3701_v28 = vsel %vm58_vm0, %v3697_v55, 0.0 }
0x145c   :  { %3702 = vadd.xlane.f32.xlu0 %v3701_v28 }
0x14e8   :  { %v3706_v29 = vpop.xlane.xlu1 %3705 }
0x14e9   :  { %v3708_v30 = vmul.f32 0.03125, %v3706_v29  ;;  %v3703_v32 = vpop.xlane.xlu0 %3702 }
0x14ea   :  { %v3707_v33 = vmul.f32 0.03125, %v3703_v32 }
0x14eb   :  { %v3710_v34 = vsub.f32 %v3698_v54, %v3708_v30 }
0x14ec   :  { %v3709_v35 = vsub.f32 %v3697_v55, %v3707_v33 }
0x14ed   :  { %v3712_v36 = vmul.f32 %v3710_v34, %v3710_v34 }
0x14ee   :  { %v3711_v37 = vmul.f32 %v3709_v35, %v3709_v35 }
0x14ef   :  { %v3716_v22 = vsel %vm58_vm0, %v3712_v36, 0.0 }
0x14f0   :  { %3717 = vadd.xlane.f32.xlu1 %v3716_v22  ;;  %v3713_v23 = vsel %vm58_vm0, %v3711_v37, 0.0 }
0x14f1   :  { %3714 = vadd.xlane.f32.xlu0 %v3713_v23 }
0x157d   :  { %v3718_v38 = vpop.xlane.xlu1 %3717 }
0x157e   :  { %v3720_v39 = vmul.f32 0.032258064, %v3718_v38  ;;  %v3715_v42 = vpop.xlane.xlu0 %3714 }
0x157f   :  { %v3719_v45 = vmul.f32 0.032258064, %v3715_v42 }
0x1580   :  { %4411 = vrsqrt.f32 %v3720_v39  ;;  %vm3730_vm9 = vcmp.eq.f32.partialorder %v3720_v39, inf  ;;  %v3733_v48 = vand.u32 2147483648, %v3720_v39  ;;  %vm3732_vm10 = vcmp.eq.f32.partialorder %v3720_v39, 0.0 }
0x1581   :  { %4413 = vrsqrt.f32 %v3719_v45  ;;  %vm3723_vm11 = vcmp.eq.f32.partialorder %v3719_v45, inf  ;;  %v3726_v1 = vand.u32 2147483648, %v3719_v45  ;;  %vm3725_vm12 = vcmp.eq.f32.partialorder %v3719_v45, 0.0 }
0x158a   :  { %v4412_v31 = vpop.eup %4411 }
0x158b   :  { %v4414_v51 = vpop.eup %4413  ;;  %v3729_v47 = vmul.f32 %v4412_v31, %v3720_v39 }
0x158c   :  { %v3722_v49 = vmul.f32 %v4414_v51, %v3719_v45 }
0x158d   :  { %v3731_v52 = vsel %vm3730_vm9, %v3720_v39, %v3729_v47 }
0x158e   :  { %v3734_v0 = vsel %vm3732_vm10, %v3733_v48, %v3731_v52  ;;  %v3724_v53 = vsel %vm3723_vm11, %v3719_v45, %v3722_v49 }
0x158f   :  { %v3736_v56 = vadd.f32 1e-06, %v3734_v0  ;;  %v3727_v57 = vsel %vm3725_vm12, %v3726_v1, %v3724_v53 }
0x1590   :  { %v3735_v58 = vadd.f32 1e-06, %v3727_v57 }
0x1591   :  { %4415 = vrcp.f32 %v3736_v56 }
0x1592   :  { %4417 = vrcp.f32 %v3735_v58 }
0x159b   :  { %v4416_v46 = vpop.eup %4415 }
0x159c   :  { %v4418_v60 = vpop.eup %4417  ;;  %v3740_v61 = vmul.f32 %v4416_v46, %v3710_v34 }
0x159d   :  { %v3739_v44 = vmul.f32 %v4418_v60, %v3709_v35 }
0x159e   :  { %v3742_v62 = vmul.f32 %v3740_v61, %v3699_v59 }
0x159f   :  { %v3741_v63 = vmul.f32 %v3739_v44, %v3699_v59 }
0x15a0   :  { %v3744_v2 = vadd.f32 %v3742_v62, %v3700_v43 }
0x15a1   :  { %v3743_v3 = vadd.f32 %v3741_v63, %v3700_v43 }
0x15a2   :  { %3746 = vst.msk [vmem:[#allocation8 + $0x8] sm:$0xff] %vm58_vm0, %v3744_v2 }
0x15a3   :  { %3745 = vst.msk [vmem:[#allocation8] sm:$0xff] %vm58_vm0, %v3743_v3 }
0x15a4   :  { %4474 = shalt.err (!%p4471_p6)
}
0x15a5   :  { %s4475_s4 = scalar_lea.hbm %s5034_s3, 256 }
0x15a6   :  { %p4476_p7 = scmp.ne.s32.totalorder %s5034_s3, %s4475_s4  ;;  %p4479_p8 = scmp.lt.u32.totalorder %s4475_s4, %s5034_s3 }
0x15a8   :  { %p4481_p9 = pnand %p4479_p8, %p4476_p7 }
0x15aa   :  { %4484 = shalt.err (!%p4481_p9)
}
0x15ab   :  { %3758 = dma.vmem_to_hbm [thread:$0]  %s3753_s27, 256, %s5034_s3, [#allocation5], %s4492_s22, %s4492_s22, %s4493_s23  }
0x15ac   :  { %4489 = dma.done.wait [#allocation5], 256  }
0x15ad   :  { %4490 = vsyncadd [#allocation5], 4294967040 }
0x15ae   :  { %3762 = vsyncpa [#allocation4], 1 }
0x15af   :  { %3763 = vsyncpa [#allocation7], 1 }
0x15b0   :  { %3764 = vsyncpa [#allocation5], 1 }

</bundles_post_ra>
